<compile_context>
chip_gen: v6e
topology: v6e:2x2x1
jax: 0.10.0
libtpu: 0.0.40
codegen_flags: <defaults>
</compile_context>

<pallas_src>
import math
import functools

import numpy as np
import jax
import jax.numpy as jnp
from jax import lax
from jax.experimental import pallas as pl
from jax.experimental.pallas import tpu as pltpu

EPS = 1e-5  # nn.LayerNorm default


def _layernorm(x, w, b):
    mean = jnp.mean(x, axis=-1, keepdims=True)
    var = jnp.mean((x - mean) ** 2, axis=-1, keepdims=True)
    return (x - mean) * lax.rsqrt(var + EPS) * w + b


def _gelu_exact(x):
    # nn.GELU() default: exact erf-based GELU (kept for parity with PyTorch).
    return 0.5 * x * (1.0 + lax.erf(x * (1.0 / math.sqrt(2.0))))


def encoder_layer_kernel(num_heads, kv_tile, mxu_dtype,
                         x_ref,
                         n1w_ref, n1b_ref,
                         wqkv_ref, bqkv_ref, wo_ref, bo_ref,
                         n2w_ref, n2b_ref,
                         w1_ref, b1_ref, w2_ref, b2_ref,
                         out_ref,
                         qkv_ref, o_ref, x1_ref, xn2_ref, yacc_ref):
    qi = pl.program_id(1)
    hk = pl.program_id(2)

    S, E = x_ref.shape
    tq = out_ref.shape[0]
    Dh = E // num_heads
    n_kv = S // kv_tile
    scale = 1.0 / math.sqrt(Dh)
    exact = (np.dtype(mxu_dtype) == np.dtype(np.float32))

    # ---- once per batch row (qi==0, hk==0): LN1 + QKV projection for the FULL
    # sequence, streamed in tq-row blocks, stored in VMEM scratch at MXU width.
    @pl.when(jnp.logical_and(qi == 0, hk == 0))
    def _project_qkv():
        for rb in range(S // tq):
            r0 = rb * tq
            xb = x_ref[r0:r0 + tq, :].astype(jnp.float32)
            xn = _layernorm(xb, n1w_ref[0], n1b_ref[0]).astype(mxu_dtype)
            qkv = jnp.dot(xn, wqkv_ref[...],
                          preferred_element_type=jnp.float32) + bqkv_ref[0]
            qkv_ref[r0:r0 + tq, :] = qkv.astype(mxu_dtype)

    # ---- per Q tile (hk==0): online-softmax attention over KV blocks ----------
    @pl.when(hk == 0)
    def _attention():
        row0 = pl.multiple_of(qi * tq, tq)

        for h in range(num_heads):
            q_h = qkv_ref[pl.ds(row0, tq), pl.ds(h * Dh, Dh)]          # (tq, Dh)

            def kv_step(kb, carry):
                m_i, l_i, acc = carry
                c0 = pl.multiple_of(kb * kv_tile, kv_tile)
                k_h = qkv_ref[pl.ds(c0, kv_tile), pl.ds(E + h * Dh, Dh)]
                v_h = qkv_ref[pl.ds(c0, kv_tile), pl.ds(2 * E + h * Dh, Dh)]
                # Contract last dims of both operands -> no explicit transpose.
                s = lax.dot_general(q_h, k_h, (((1,), (1,)), ((), ())),
                                    preferred_element_type=jnp.float32) * scale
                m_new = jnp.maximum(m_i, jnp.max(s, axis=-1, keepdims=True))
                alpha = jnp.exp(m_i - m_new)
                p = jnp.exp(s - m_new)
                l_new = alpha * l_i + jnp.sum(p, axis=-1, keepdims=True)
                acc_new = alpha * acc + jnp.dot(p.astype(mxu_dtype), v_h,
                                                preferred_element_type=jnp.float32)
                return m_new, l_new, acc_new

            carry0 = (jnp.full((tq, 1), -jnp.inf, jnp.float32),
                      jnp.zeros((tq, 1), jnp.float32),
                      jnp.zeros((tq, Dh), jnp.float32))
            m_i, l_i, acc = lax.fori_loop(0, n_kv, kv_step, carry0)

            if exact:
                o_h = acc / l_i                                         # exact parity path
            else:
                o_h = acc * pl.reciprocal(l_i, approx=True)             # EUP slot
            # Concatenate heads in VMEM scratch (Ref store, no vreg relayout chain).
            o_ref[:, h * Dh:(h + 1) * Dh] = o_h.astype(mxu_dtype)

        # One full-depth out-projection matmul over all heads.
        attn = jnp.dot(o_ref[...], wo_ref[...], preferred_element_type=jnp.float32)
        x_tile = x_ref[pl.ds(row0, tq), :].astype(jnp.float32)
        x1 = x_tile + attn + bo_ref[0]
        x1_ref[...] = x1
        xn2_ref[...] = _layernorm(x1, n2w_ref[0], n2b_ref[0]).astype(mxu_dtype)
        yacc_ref[...] = jnp.zeros_like(yacc_ref)

    # ---- MLP, streamed over the Hm reduction axis (one hidden block per step) --
    h1 = jnp.dot(xn2_ref[...], w1_ref[...],
                 preferred_element_type=jnp.float32) + b1_ref[0]        # (tq, th) f32
    h1 = _gelu_exact(h1).astype(mxu_dtype)
    yacc_ref[...] += jnp.dot(h1, w2_ref[...],
                             preferred_element_type=jnp.float32)        # (tq, E) f32

    @pl.when(hk == pl.num_programs(2) - 1)
    def _finalize():
        out_ref[...] = (x1_ref[...] + yacc_ref[...] + b2_ref[0]).astype(out_ref.dtype)


def _pick_tile(n, max_tile):
    """Largest divisor of n <= max_tile, preferring lane-aligned (x128) tiles."""
    if n <= max_tile:
        return n
    best = None
    for t in range(max_tile, 0, -1):
        if n % t == 0:
            if t % 128 == 0:
                return t
            if best is None:
                best = t
    return best if best is not None else n


def _vmem_limit_bytes():
    # Raise the scoped-VMEM cap above the small defaults, leaving headroom below
    # physical capacity (128 MiB on v5e/v6e, 64 MiB on v7x).
    try:
        cap = pltpu.get_tpu_info().vmem_capacity_bytes
    except Exception:
        cap = 64 * 1024 * 1024
    return int(min(cap * 7 // 8, 100 * 1024 * 1024))


def transformer_encoder_layer(x, params, num_heads, *,
                              mxu_dtype=jnp.bfloat16,
                              seq_tile=256, kv_tile=256, hm_tile=512):
    """x: (B, S, E).  params: dict of pre-transposed weights (see __main__).

    mxu_dtype: dtype of the MXU operands for every matmul (accumulation is always
    f32).  bfloat16 is the default on all generations (full MXU rate, half the
    weight DMA/VMEM bytes); jnp.float32 gives exact parity.  LayerNorm / softmax /
    GELU math always stays in f32.
    """
    B, S, E = x.shape
    Hm = params["w1_t"].shape[1]
    assert E % num_heads == 0

    tq = _pick_tile(S, seq_tile)     # Q tile (rows per attention/MLP tile)
    tk = _pick_tile(S, kv_tile)      # KV block for online softmax
    th = _pick_tile(Hm, hm_tile)     # streamed MLP hidden block
    n_q, n_hk = S // tq, Hm // th

    # Matmul operands (weights) are pre-cast host-side so they are stored and
    # DMA'd at MXU width; biases & LayerNorm params stay f32.
    wqkv = params["wqkv_t"].astype(mxu_dtype)
    wo = params["wo_t"].astype(mxu_dtype)
    w1 = params["w1_t"].astype(mxu_dtype)
    w2 = params["w2_t"].astype(mxu_dtype)

    kernel = functools.partial(encoder_layer_kernel, num_heads, tk, mxu_dtype)

    def const_spec(shape):
        n = len(shape)
        return pl.BlockSpec(shape, lambda b, q, h, _n=n: (0,) * _n)

    fn = pl.pallas_call(
        kernel,
        out_shape=jax.ShapeDtypeStruct((B, S, E), x.dtype),
        grid=(B, n_q, n_hk),
        in_specs=[
            # x: full sequence per batch (needed for the per-row QKV projection);
            # batch dim squeezed out of the kernel view. DMA'd once per batch.
            pl.BlockSpec((None, S, E), lambda b, q, h: (b, 0, 0)),
            const_spec((1, E)),                                   # norm1 weight
            const_spec((1, E)),                                   # norm1 bias
            const_spec((E, 3 * E)),                               # in_proj weight^T
            const_spec((1, 3 * E)),                               # in_proj bias
            const_spec((E, E)),                                   # out_proj weight^T
            const_spec((1, E)),                                   # out_proj bias
            const_spec((1, E)),                                   # norm2 weight
            const_spec((1, E)),                                   # norm2 bias
            pl.BlockSpec((E, th), lambda b, q, h: (0, h)),        # fc1 weight^T (streamed)
            pl.BlockSpec((1, th), lambda b, q, h: (0, h)),        # fc1 bias     (streamed)
            pl.BlockSpec((th, E), lambda b, q, h: (h, 0)),        # fc2 weight^T (streamed)
            const_spec((1, E)),                                   # fc2 bias
        ],
        out_specs=pl.BlockSpec((None, tq, E), lambda b, q, h: (b, q, 0)),
        scratch_shapes=[
            pltpu.VMEM((S, 3 * E), mxu_dtype),   # QKV for the whole row, MXU width
            pltpu.VMEM((tq, E), mxu_dtype),      # concatenated per-head attn outputs
            pltpu.VMEM((tq, E), jnp.float32),    # x1 = x + attn (residual 1)
            pltpu.VMEM((tq, E), mxu_dtype),      # LN2(x1), stored at MXU width
            pltpu.VMEM((tq, E), jnp.float32),    # MLP f32 accumulator
        ],
        compiler_params=pltpu.CompilerParams(
            dimension_semantics=("parallel", "arbitrary", "arbitrary"),
            vmem_limit_bytes=_vmem_limit_bytes(),
        ),
    )
    return fn(x,
              params["n1_w"], params["n1_b"],
              wqkv, params["bqkv"], wo, params["bo"],
              params["n2_w"], params["n2_b"],
              w1, params["b1"], w2, params["b2"])


def reference_forward(x, params, num_heads):
    """Pure-JAX f32 reference mirroring the PyTorch module's semantics."""
    B, S, E = x.shape
    Dh = E // num_heads
    scale = 1.0 / math.sqrt(Dh)

    def ln(z, w, b):
        m = jnp.mean(z, axis=-1, keepdims=True)
        v = jnp.mean((z - m) ** 2, axis=-1, keepdims=True)
        return (z - m) / jnp.sqrt(v + EPS) * w[0] + b[0]

    xn = ln(x, params["n1_w"], params["n1_b"])
    qkv = xn @ params["wqkv_t"] + params["bqkv"][0]
    q, k, v = qkv[..., :E], qkv[..., E:2 * E], qkv[..., 2 * E:]
    q = q.reshape(B, S, num_heads, Dh).transpose(0, 2, 1, 3) * scale
    k = k.reshape(B, S, num_heads, Dh).transpose(0, 2, 1, 3)
    v = v.reshape(B, S, num_heads, Dh).transpose(0, 2, 1, 3)
    scores = jnp.einsum("bhqd,bhkd->bhqk", q, k)
    p = jax.nn.softmax(scores, axis=-1)
    o = jnp.einsum("bhqk,bhkd->bhqd", p, v).transpose(0, 2, 1, 3).reshape(B, S, E)
    o = o @ params["wo_t"] + params["bo"][0]
    x1 = x + o

    xn2 = ln(x1, params["n2_w"], params["n2_b"])
    h1 = xn2 @ params["w1_t"] + params["b1"][0]
    h1 = 0.5 * h1 * (1.0 + lax.erf(h1 / math.sqrt(2.0)))
    y = h1 @ params["w2_t"] + params["b2"][0]
    return x1 + y


if __name__ == "__main__":
    # Small but lane-aligned demo config (E % 128 == 0, S % 8 == 0).
    B, S, E, num_heads = 2, 16, 128, 4
    Hm = int(E * 4)          # mlp_ratio = 4 -> 512

    key = jax.random.PRNGKey(0)
    ks = jax.random.split(key, 13)
    f32 = jnp.float32

    params = {
        "n1_w":   1.0 + 0.05 * jax.random.normal(ks[0], (1, E), f32),
        "n1_b":   0.05 * jax.random.normal(ks[1], (1, E), f32),
        # PyTorch in_proj_weight is (3E, E); we store its transpose (E, 3E).
        "wqkv_t": 0.05 * jax.random.normal(ks[2], (E, 3 * E), f32),
        "bqkv":   0.05 * jax.random.normal(ks[3], (1, 3 * E), f32),
        "wo_t":   0.05 * jax.random.normal(ks[4], (E, E), f32),
        "bo":     0.05 * jax.random.normal(ks[5], (1, E), f32),
        "n2_w":   1.0 + 0.05 * jax.random.normal(ks[6], (1, E), f32),
        "n2_b":   0.05 * jax.random.normal(ks[7], (1, E), f32),
        "w1_t":   0.05 * jax.random.normal(ks[8], (E, Hm), f32),
        "b1":     0.05 * jax.random.normal(ks[9], (1, Hm), f32),
        "w2_t":   0.05 * jax.random.normal(ks[10], (Hm, E), f32),
        "b2":     0.05 * jax.random.normal(ks[11], (1, E), f32),
    }
    x = jax.random.normal(ks[12], (B, S, E), f32)

    ref = jax.block_until_ready(reference_forward(x, params, num_heads))

    # 1) Exact-width MXU path (f32 operands, exact softmax division) -- tight check.
    out_f32 = jax.block_until_ready(
        transformer_encoder_layer(x, params, num_heads, mxu_dtype=jnp.float32))
    assert out_f32.shape == (B, S, E)
    np.testing.assert_allclose(np.asarray(out_f32), np.asarray(ref),
                               rtol=5e-3, atol=5e-3)

    # 2) Tiny tiles: exercises multiple Q tiles, multiple online-softmax KV blocks
    #    and the streamed/accumulated MLP reduction axis.
    out_tiled = jax.block_until_ready(
        transformer_encoder_layer(x, params, num_heads, mxu_dtype=jnp.float32,
                                  seq_tile=8, kv_tile=8, hm_tile=256))
    np.testing.assert_allclose(np.asarray(out_tiled), np.asarray(ref),
                               rtol=5e-3, atol=5e-3)

    # 3) Default bf16-MXU path (f32 activations in/out, f32 accumulation).
    out_bf16 = jax.block_until_ready(
        transformer_encoder_layer(x, params, num_heads))
    np.testing.assert_allclose(np.asarray(out_bf16), np.asarray(ref),
                               rtol=5e-2, atol=2e-2)

    # 4) bf16 activations in/out as well (halves x/out HBM traffic).
    out_bf16act = jax.block_until_ready(
        transformer_encoder_layer(x.astype(jnp.bfloat16), params, num_heads))
    np.testing.assert_allclose(np.asarray(out_bf16act.astype(jnp.float32)),
                               np.asarray(ref), rtol=5e-2, atol=5e-2)

    print("KERNEL_OK")
</pallas_src>

<mosaic_0001>
module attributes {stable_mosaic.version = 11 : i64} {
  func.func @encoder_layer_kernel(%arg0: i32, %arg1: i32, %arg2: i32, %arg3: memref<1x16x128xf32, #tpu.memory_space<vmem>>, %arg4: memref<1x128xf32, #tpu.memory_space<vmem>>, %arg5: memref<1x128xf32, #tpu.memory_space<vmem>>, %arg6: memref<128x384xf32, #tpu.memory_space<vmem>>, %arg7: memref<1x384xf32, #tpu.memory_space<vmem>>, %arg8: memref<128x128xf32, #tpu.memory_space<vmem>>, %arg9: memref<1x128xf32, #tpu.memory_space<vmem>>, %arg10: memref<1x128xf32, #tpu.memory_space<vmem>>, %arg11: memref<1x128xf32, #tpu.memory_space<vmem>>, %arg12: memref<128x512xf32, #tpu.memory_space<vmem>>, %arg13: memref<1x512xf32, #tpu.memory_space<vmem>>, %arg14: memref<512x128xf32, #tpu.memory_space<vmem>>, %arg15: memref<1x128xf32, #tpu.memory_space<vmem>>, %arg16: memref<1x16x128xf32, #tpu.memory_space<vmem>>, %arg17: memref<16x384xf32, #tpu.memory_space<vmem>>, %arg18: memref<16x128xf32, #tpu.memory_space<vmem>>, %arg19: memref<16x128xf32, #tpu.memory_space<vmem>>, %arg20: memref<16x128xf32, #tpu.memory_space<vmem>>, %arg21: memref<16x128xf32, #tpu.memory_space<vmem>>) attributes {dimension_semantics = [#tpu.dimension_semantics<parallel>, #tpu.dimension_semantics<arbitrary>, #tpu.dimension_semantics<arbitrary>], iteration_bounds = array<i64: 2, 1, 1>, scalar_prefetch = 0 : i64, scratch_operands = 5 : i64, tpu.core_type = #tpu.core_type<tc>, window_params = [{transform_indices = @transform_0, window_bounds = array<i64: 1, 16, 128>}, {pipeline_mode = #tpu.pipeline_mode<synchronous>, transform_indices = @transform_1, window_bounds = array<i64: 1, 128>}, {pipeline_mode = #tpu.pipeline_mode<synchronous>, transform_indices = @transform_2, window_bounds = array<i64: 1, 128>}, {pipeline_mode = #tpu.pipeline_mode<synchronous>, transform_indices = @transform_3, window_bounds = array<i64: 128, 384>}, {pipeline_mode = #tpu.pipeline_mode<synchronous>, transform_indices = @transform_4, window_bounds = array<i64: 1, 384>}, {pipeline_mode = #tpu.pipeline_mode<synchronous>, transform_indices = @transform_5, window_bounds = array<i64: 128, 128>}, {pipeline_mode = #tpu.pipeline_mode<synchronous>, transform_indices = @transform_6, window_bounds = array<i64: 1, 128>}, {pipeline_mode = #tpu.pipeline_mode<synchronous>, transform_indices = @transform_7, window_bounds = array<i64: 1, 128>}, {pipeline_mode = #tpu.pipeline_mode<synchronous>, transform_indices = @transform_8, window_bounds = array<i64: 1, 128>}, {transform_indices = @transform_9, window_bounds = array<i64: 128, 512>}, {transform_indices = @transform_10, window_bounds = array<i64: 1, 512>}, {transform_indices = @transform_11, window_bounds = array<i64: 512, 128>}, {pipeline_mode = #tpu.pipeline_mode<synchronous>, transform_indices = @transform_12, window_bounds = array<i64: 1, 128>}, {transform_indices = @transform_13, window_bounds = array<i64: 1, 16, 128>}]} {
    %c0_i32 = arith.constant 0 : i32
    %0 = arith.cmpi eq, %arg1, %c0_i32 : i32
    %c0_i32_0 = arith.constant 0 : i32
    %1 = arith.cmpi eq, %arg2, %c0_i32_0 : i32
    %2 = arith.andi %0, %1 : i1
    %3 = arith.extui %2 : i1 to i32
    %c0_i32_1 = arith.constant 0 : i32
    %4 = arith.cmpi ne, %3, %c0_i32_1 : i32
    scf.if %4 {
      %c0_21 = arith.constant 0 : index
      %c0_22 = arith.constant 0 : index
      %c0_23 = arith.constant 0 : index
      %32 = vector.load %arg3[%c0_21, %c0_22, %c0_23] : memref<1x16x128xf32, #tpu.memory_space<vmem>>, vector<1x16x128xf32>
      %33 = vector.shape_cast %32 : vector<1x16x128xf32> to vector<16x128xf32>
      %c0_24 = arith.constant 0 : index
      %c0_25 = arith.constant 0 : index
      %34 = vector.load %arg4[%c0_24, %c0_25] : memref<1x128xf32, #tpu.memory_space<vmem>>, vector<1x128xf32>
      %35 = vector.shape_cast %34 : vector<1x128xf32> to vector<128xf32>
      %c0_26 = arith.constant 0 : index
      %c0_27 = arith.constant 0 : index
      %36 = vector.load %arg5[%c0_26, %c0_27] : memref<1x128xf32, #tpu.memory_space<vmem>>, vector<1x128xf32>
      %37 = vector.shape_cast %36 : vector<1x128xf32> to vector<128xf32>
      %cst_28 = arith.constant dense<0.000000e+00> : vector<16xf32>
      %38 = vector.multi_reduction <add>, %33, %cst_28 [1] : vector<16x128xf32> to vector<16xf32>
      %39 = vector.shape_cast %38 : vector<16xf32> to vector<16x1xf32>
      %cst_29 = arith.constant 1.280000e+02 : f32
      %40 = vector.broadcast %cst_29 : f32 to vector<16x1xf32>
      %41 = arith.divf %39, %40 : vector<16x1xf32>
      %42 = vector.broadcast %41 : vector<16x1xf32> to vector<16x128xf32>
      %43 = arith.subf %33, %42 : vector<16x128xf32>
      %44 = arith.mulf %43, %43 : vector<16x128xf32>
      %cst_30 = arith.constant dense<0.000000e+00> : vector<16xf32>
      %45 = vector.multi_reduction <add>, %44, %cst_30 [1] : vector<16x128xf32> to vector<16xf32>
      %46 = vector.shape_cast %45 : vector<16xf32> to vector<16x1xf32>
      %cst_31 = arith.constant 1.280000e+02 : f32
      %47 = vector.broadcast %cst_31 : f32 to vector<16x1xf32>
      %48 = arith.divf %46, %47 : vector<16x1xf32>
      %49 = vector.broadcast %41 : vector<16x1xf32> to vector<16x128xf32>
      %50 = arith.subf %33, %49 : vector<16x128xf32>
      %cst_32 = arith.constant 9.99999974E-6 : f32
      %51 = vector.broadcast %cst_32 : f32 to vector<16x1xf32>
      %52 = arith.addf %48, %51 : vector<16x1xf32>
      %53 = math.rsqrt %52 : vector<16x1xf32>
      %54 = vector.broadcast %53 : vector<16x1xf32> to vector<16x128xf32>
      %55 = arith.mulf %50, %54 : vector<16x128xf32>
      %56 = vector.shape_cast %35 : vector<128xf32> to vector<1x128xf32>
      %57 = vector.broadcast %56 : vector<1x128xf32> to vector<16x128xf32>
      %58 = arith.mulf %55, %57 : vector<16x128xf32>
      %59 = vector.shape_cast %37 : vector<128xf32> to vector<1x128xf32>
      %60 = vector.broadcast %59 : vector<1x128xf32> to vector<16x128xf32>
      %61 = arith.addf %58, %60 : vector<16x128xf32>
      %c0_33 = arith.constant 0 : index
      %c0_34 = arith.constant 0 : index
      %62 = vector.load %arg6[%c0_33, %c0_34] : memref<128x384xf32, #tpu.memory_space<vmem>>, vector<128x384xf32>
      %cst_35 = arith.constant dense<0.000000e+00> : vector<16x384xf32>
      %63 = tpu.matmul %61, %62, %cst_35 {dimension_numbers = #tpu.dot_dimension_numbers<[1], [0], [0], [1], [0, 0, 1, 1], [], []>} : vector<16x128xf32>, vector<128x384xf32>, vector<16x384xf32> -> vector<16x384xf32>
      %c0_36 = arith.constant 0 : index
      %c0_37 = arith.constant 0 : index
      %64 = vector.load %arg7[%c0_36, %c0_37] : memref<1x384xf32, #tpu.memory_space<vmem>>, vector<1x384xf32>
      %65 = vector.shape_cast %64 : vector<1x384xf32> to vector<384xf32>
      %66 = vector.shape_cast %65 : vector<384xf32> to vector<1x384xf32>
      %67 = vector.broadcast %66 : vector<1x384xf32> to vector<16x384xf32>
      %68 = arith.addf %63, %67 : vector<16x384xf32>
      %c0_38 = arith.constant 0 : index
      %c0_39 = arith.constant 0 : index
      %69 = vector.load %arg17[%c0_38, %c0_39] : memref<16x384xf32, #tpu.memory_space<vmem>>, vector<16x384xf32>
      tpu.vector_store %arg17[%c0_38, %c0_39], %68 {strides = array<i32>} : memref<16x384xf32, #tpu.memory_space<vmem>>, vector<16x384xf32>,
    } else {
    }
    %c0_i32_2 = arith.constant 0 : i32
    %5 = arith.cmpi eq, %arg2, %c0_i32_2 : i32
    %6 = arith.extui %5 : i1 to i32
    %c0_i32_3 = arith.constant 0 : i32
    %7 = arith.cmpi ne, %6, %c0_i32_3 : i32
    scf.if %7 {
      %c16_i32 = arith.constant 16 : i32
      %32 = arith.muli %arg1, %c16_i32 : i32
      %33 = tpu.assume_multiple %32, 16 : i32
      %34 = arith.index_cast %33 : i32 to index
      %c0_21 = arith.constant 0 : index
      %35 = vector.load %arg17[%34, %c0_21] : memref<16x384xf32, #tpu.memory_space<vmem>>, vector<16x32xf32>
      %cst_22 = arith.constant 0xFF800000 : f32
      %36 = vector.broadcast %cst_22 : f32 to vector<16x1xf32>
      %cst_23 = arith.constant 0.000000e+00 : f32
      %37 = vector.broadcast %cst_23 : f32 to vector<16x1xf32>
      %cst_24 = arith.constant 0.000000e+00 : f32
      %38 = vector.broadcast %cst_24 : f32 to vector<16x32xf32>
      %c0_i32_25 = arith.constant 0 : i32
      %c16_i32_26 = arith.constant 16 : i32
      %39 = arith.muli %c0_i32_25, %c16_i32_26 : i32
      %40 = tpu.assume_multiple %39, 16 : i32
      %41 = arith.index_cast %40 : i32 to index
      %c128 = arith.constant 128 : index
      %42 = vector.load %arg17[%41, %c128] : memref<16x384xf32, #tpu.memory_space<vmem>>, vector<16x32xf32>
      %43 = arith.index_cast %40 : i32 to index
      %c256 = arith.constant 256 : index
      %44 = vector.load %arg17[%43, %c256] : memref<16x384xf32, #tpu.memory_space<vmem>>, vector<16x32xf32>
      %cst_27 = arith.constant dense<0.000000e+00> : vector<16x16xf32>
      %45 = tpu.matmul %35, %42, %cst_27 {dimension_numbers = #tpu.dot_dimension_numbers<[1], [1], [0], [0], [0, 0, 1, 0], [], []>} : vector<16x32xf32>, vector<16x32xf32>, vector<16x16xf32> -> vector<16x16xf32>
      %cst_28 = arith.constant 0.176776692 : f32
      %46 = vector.broadcast %cst_28 : f32 to vector<16x16xf32>
      %47 = arith.mulf %45, %46 : vector<16x16xf32>
      %cst_29 = arith.constant dense<0xFF800000> : vector<16xf32>
      %48 = vector.multi_reduction <maximumf>, %47, %cst_29 [1] : vector<16x16xf32> to vector<16xf32>
      %49 = vector.shape_cast %48 : vector<16xf32> to vector<16x1xf32>
      %50 = arith.maximumf %36, %49 : vector<16x1xf32>
      %51 = arith.subf %36, %50 : vector<16x1xf32>
      %52 = math.exp %51 : vector<16x1xf32>
      %53 = vector.broadcast %50 : vector<16x1xf32> to vector<16x16xf32>
      %54 = arith.subf %47, %53 : vector<16x16xf32>
      %55 = math.exp %54 : vector<16x16xf32>
      %56 = arith.mulf %52, %37 : vector<16x1xf32>
      %cst_30 = arith.constant dense<0.000000e+00> : vector<16xf32>
      %57 = vector.multi_reduction <add>, %55, %cst_30 [1] : vector<16x16xf32> to vector<16xf32>
      %58 = vector.shape_cast %57 : vector<16xf32> to vector<16x1xf32>
      %59 = arith.addf %56, %58 : vector<16x1xf32>
      %60 = vector.broadcast %52 : vector<16x1xf32> to vector<16x32xf32>
      %61 = arith.mulf %60, %38 : vector<16x32xf32>
      %cst_31 = arith.constant dense<0.000000e+00> : vector<16x32xf32>
      %62 = tpu.matmul %55, %44, %cst_31 {dimension_numbers = #tpu.dot_dimension_numbers<[1], [0], [0], [1], [0, 0, 1, 1], [], []>} : vector<16x16xf32>, vector<16x32xf32>, vector<16x32xf32> -> vector<16x32xf32>
      %63 = arith.addf %61, %62 : vector<16x32xf32>
      %c1_i32 = arith.constant 1 : i32
      %64 = vector.broadcast %59 : vector<16x1xf32> to vector<16x32xf32>
      %65 = arith.divf %63, %64 : vector<16x32xf32>
      %c0_32 = arith.constant 0 : index
      %c0_33 = arith.constant 0 : index
      %66 = vector.load %arg18[%c0_32, %c0_33] : memref<16x128xf32, #tpu.memory_space<vmem>>, vector<16x32xf32>
      tpu.vector_store %arg18[%c0_32, %c0_33], %65 {strides = array<i32>} : memref<16x128xf32, #tpu.memory_space<vmem>>, vector<16x32xf32>,
      %67 = arith.index_cast %33 : i32 to index
      %c32 = arith.constant 32 : index
      %68 = vector.load %arg17[%67, %c32] : memref<16x384xf32, #tpu.memory_space<vmem>>, vector<16x32xf32>
      %cst_34 = arith.constant 0xFF800000 : f32
      %69 = vector.broadcast %cst_34 : f32 to vector<16x1xf32>
      %cst_35 = arith.constant 0.000000e+00 : f32
      %70 = vector.broadcast %cst_35 : f32 to vector<16x1xf32>
      %cst_36 = arith.constant 0.000000e+00 : f32
      %71 = vector.broadcast %cst_36 : f32 to vector<16x32xf32>
      %c0_i32_37 = arith.constant 0 : i32
      %c16_i32_38 = arith.constant 16 : i32
      %72 = arith.muli %c0_i32_37, %c16_i32_38 : i32
      %73 = tpu.assume_multiple %72, 16 : i32
      %74 = arith.index_cast %73 : i32 to index
      %c160 = arith.constant 160 : index
      %75 = vector.load %arg17[%74, %c160] : memref<16x384xf32, #tpu.memory_space<vmem>>, vector<16x32xf32>
      %76 = arith.index_cast %73 : i32 to index
      %c288 = arith.constant 288 : index
      %77 = vector.load %arg17[%76, %c288] : memref<16x384xf32, #tpu.memory_space<vmem>>, vector<16x32xf32>
      %cst_39 = arith.constant dense<0.000000e+00> : vector<16x16xf32>
      %78 = tpu.matmul %68, %75, %cst_39 {dimension_numbers = #tpu.dot_dimension_numbers<[1], [1], [0], [0], [0, 0, 1, 0], [], []>} : vector<16x32xf32>, vector<16x32xf32>, vector<16x16xf32> -> vector<16x16xf32>
      %cst_40 = arith.constant 0.176776692 : f32
      %79 = vector.broadcast %cst_40 : f32 to vector<16x16xf32>
      %80 = arith.mulf %78, %79 : vector<16x16xf32>
      %cst_41 = arith.constant dense<0xFF800000> : vector<16xf32>
      %81 = vector.multi_reduction <maximumf>, %80, %cst_41 [1] : vector<16x16xf32> to vector<16xf32>
      %82 = vector.shape_cast %81 : vector<16xf32> to vector<16x1xf32>
      %83 = arith.maximumf %69, %82 : vector<16x1xf32>
      %84 = arith.subf %69, %83 : vector<16x1xf32>
      %85 = math.exp %84 : vector<16x1xf32>
      %86 = vector.broadcast %83 : vector<16x1xf32> to vector<16x16xf32>
      %87 = arith.subf %80, %86 : vector<16x16xf32>
      %88 = math.exp %87 : vector<16x16xf32>
      %89 = arith.mulf %85, %70 : vector<16x1xf32>
      %cst_42 = arith.constant dense<0.000000e+00> : vector<16xf32>
      %90 = vector.multi_reduction <add>, %88, %cst_42 [1] : vector<16x16xf32> to vector<16xf32>
      %91 = vector.shape_cast %90 : vector<16xf32> to vector<16x1xf32>
      %92 = arith.addf %89, %91 : vector<16x1xf32>
      %93 = vector.broadcast %85 : vector<16x1xf32> to vector<16x32xf32>
      %94 = arith.mulf %93, %71 : vector<16x32xf32>
      %cst_43 = arith.constant dense<0.000000e+00> : vector<16x32xf32>
      %95 = tpu.matmul %88, %77, %cst_43 {dimension_numbers = #tpu.dot_dimension_numbers<[1], [0], [0], [1], [0, 0, 1, 1], [], []>} : vector<16x16xf32>, vector<16x32xf32>, vector<16x32xf32> -> vector<16x32xf32>
      %96 = arith.addf %94, %95 : vector<16x32xf32>
      %c1_i32_44 = arith.constant 1 : i32
      %97 = vector.broadcast %92 : vector<16x1xf32> to vector<16x32xf32>
      %98 = arith.divf %96, %97 : vector<16x32xf32>
      %c0_45 = arith.constant 0 : index
      %c32_46 = arith.constant 32 : index
      %99 = vector.load %arg18[%c0_45, %c32_46] : memref<16x128xf32, #tpu.memory_space<vmem>>, vector<16x32xf32>
      tpu.vector_store %arg18[%c0_45, %c32_46], %98 {strides = array<i32>} : memref<16x128xf32, #tpu.memory_space<vmem>>, vector<16x32xf32>,
      %100 = arith.index_cast %33 : i32 to index
      %c64 = arith.constant 64 : index
      %101 = vector.load %arg17[%100, %c64] : memref<16x384xf32, #tpu.memory_space<vmem>>, vector<16x32xf32>
      %cst_47 = arith.constant 0xFF800000 : f32
      %102 = vector.broadcast %cst_47 : f32 to vector<16x1xf32>
      %cst_48 = arith.constant 0.000000e+00 : f32
      %103 = vector.broadcast %cst_48 : f32 to vector<16x1xf32>
      %cst_49 = arith.constant 0.000000e+00 : f32
      %104 = vector.broadcast %cst_49 : f32 to vector<16x32xf32>
      %c0_i32_50 = arith.constant 0 : i32
      %c16_i32_51 = arith.constant 16 : i32
      %105 = arith.muli %c0_i32_50, %c16_i32_51 : i32
      %106 = tpu.assume_multiple %105, 16 : i32
      %107 = arith.index_cast %106 : i32 to index
      %c192 = arith.constant 192 : index
      %108 = vector.load %arg17[%107, %c192] : memref<16x384xf32, #tpu.memory_space<vmem>>, vector<16x32xf32>
      %109 = arith.index_cast %106 : i32 to index
      %c320 = arith.constant 320 : index
      %110 = vector.load %arg17[%109, %c320] : memref<16x384xf32, #tpu.memory_space<vmem>>, vector<16x32xf32>
      %cst_52 = arith.constant dense<0.000000e+00> : vector<16x16xf32>
      %111 = tpu.matmul %101, %108, %cst_52 {dimension_numbers = #tpu.dot_dimension_numbers<[1], [1], [0], [0], [0, 0, 1, 0], [], []>} : vector<16x32xf32>, vector<16x32xf32>, vector<16x16xf32> -> vector<16x16xf32>
      %cst_53 = arith.constant 0.176776692 : f32
      %112 = vector.broadcast %cst_53 : f32 to vector<16x16xf32>
      %113 = arith.mulf %111, %112 : vector<16x16xf32>
      %cst_54 = arith.constant dense<0xFF800000> : vector<16xf32>
      %114 = vector.multi_reduction <maximumf>, %113, %cst_54 [1] : vector<16x16xf32> to vector<16xf32>
      %115 = vector.shape_cast %114 : vector<16xf32> to vector<16x1xf32>
      %116 = arith.maximumf %102, %115 : vector<16x1xf32>
      %117 = arith.subf %102, %116 : vector<16x1xf32>
      %118 = math.exp %117 : vector<16x1xf32>
      %119 = vector.broadcast %116 : vector<16x1xf32> to vector<16x16xf32>
      %120 = arith.subf %113, %119 : vector<16x16xf32>
      %121 = math.exp %120 : vector<16x16xf32>
      %122 = arith.mulf %118, %103 : vector<16x1xf32>
      %cst_55 = arith.constant dense<0.000000e+00> : vector<16xf32>
      %123 = vector.multi_reduction <add>, %121, %cst_55 [1] : vector<16x16xf32> to vector<16xf32>
      %124 = vector.shape_cast %123 : vector<16xf32> to vector<16x1xf32>
      %125 = arith.addf %122, %124 : vector<16x1xf32>
      %126 = vector.broadcast %118 : vector<16x1xf32> to vector<16x32xf32>
      %127 = arith.mulf %126, %104 : vector<16x32xf32>
      %cst_56 = arith.constant dense<0.000000e+00> : vector<16x32xf32>
      %128 = tpu.matmul %121, %110, %cst_56 {dimension_numbers = #tpu.dot_dimension_numbers<[1], [0], [0], [1], [0, 0, 1, 1], [], []>} : vector<16x16xf32>, vector<16x32xf32>, vector<16x32xf32> -> vector<16x32xf32>
      %129 = arith.addf %127, %128 : vector<16x32xf32>
      %c1_i32_57 = arith.constant 1 : i32
      %130 = vector.broadcast %125 : vector<16x1xf32> to vector<16x32xf32>
      %131 = arith.divf %129, %130 : vector<16x32xf32>
      %c0_58 = arith.constant 0 : index
      %c64_59 = arith.constant 64 : index
      %132 = vector.load %arg18[%c0_58, %c64_59] : memref<16x128xf32, #tpu.memory_space<vmem>>, vector<16x32xf32>
      tpu.vector_store %arg18[%c0_58, %c64_59], %131 {strides = array<i32>} : memref<16x128xf32, #tpu.memory_space<vmem>>, vector<16x32xf32>,
      %133 = arith.index_cast %33 : i32 to index
      %c96 = arith.constant 96 : index
      %134 = vector.load %arg17[%133, %c96] : memref<16x384xf32, #tpu.memory_space<vmem>>, vector<16x32xf32>
      %cst_60 = arith.constant 0xFF800000 : f32
      %135 = vector.broadcast %cst_60 : f32 to vector<16x1xf32>
      %cst_61 = arith.constant 0.000000e+00 : f32
      %136 = vector.broadcast %cst_61 : f32 to vector<16x1xf32>
      %cst_62 = arith.constant 0.000000e+00 : f32
      %137 = vector.broadcast %cst_62 : f32 to vector<16x32xf32>
      %c0_i32_63 = arith.constant 0 : i32
      %c16_i32_64 = arith.constant 16 : i32
      %138 = arith.muli %c0_i32_63, %c16_i32_64 : i32
      %139 = tpu.assume_multiple %138, 16 : i32
      %140 = arith.index_cast %139 : i32 to index
      %c224 = arith.constant 224 : index
      %141 = vector.load %arg17[%140, %c224] : memref<16x384xf32, #tpu.memory_space<vmem>>, vector<16x32xf32>
      %142 = arith.index_cast %139 : i32 to index
      %c352 = arith.constant 352 : index
      %143 = vector.load %arg17[%142, %c352] : memref<16x384xf32, #tpu.memory_space<vmem>>, vector<16x32xf32>
      %cst_65 = arith.constant dense<0.000000e+00> : vector<16x16xf32>
      %144 = tpu.matmul %134, %141, %cst_65 {dimension_numbers = #tpu.dot_dimension_numbers<[1], [1], [0], [0], [0, 0, 1, 0], [], []>} : vector<16x32xf32>, vector<16x32xf32>, vector<16x16xf32> -> vector<16x16xf32>
      %cst_66 = arith.constant 0.176776692 : f32
      %145 = vector.broadcast %cst_66 : f32 to vector<16x16xf32>
      %146 = arith.mulf %144, %145 : vector<16x16xf32>
      %cst_67 = arith.constant dense<0xFF800000> : vector<16xf32>
      %147 = vector.multi_reduction <maximumf>, %146, %cst_67 [1] : vector<16x16xf32> to vector<16xf32>
      %148 = vector.shape_cast %147 : vector<16xf32> to vector<16x1xf32>
      %149 = arith.maximumf %135, %148 : vector<16x1xf32>
      %150 = arith.subf %135, %149 : vector<16x1xf32>
      %151 = math.exp %150 : vector<16x1xf32>
      %152 = vector.broadcast %149 : vector<16x1xf32> to vector<16x16xf32>
      %153 = arith.subf %146, %152 : vector<16x16xf32>
      %154 = math.exp %153 : vector<16x16xf32>
      %155 = arith.mulf %151, %136 : vector<16x1xf32>
      %cst_68 = arith.constant dense<0.000000e+00> : vector<16xf32>
      %156 = vector.multi_reduction <add>, %154, %cst_68 [1] : vector<16x16xf32> to vector<16xf32>
      %157 = vector.shape_cast %156 : vector<16xf32> to vector<16x1xf32>
      %158 = arith.addf %155, %157 : vector<16x1xf32>
      %159 = vector.broadcast %151 : vector<16x1xf32> to vector<16x32xf32>
      %160 = arith.mulf %159, %137 : vector<16x32xf32>
      %cst_69 = arith.constant dense<0.000000e+00> : vector<16x32xf32>
      %161 = tpu.matmul %154, %143, %cst_69 {dimension_numbers = #tpu.dot_dimension_numbers<[1], [0], [0], [1], [0, 0, 1, 1], [], []>} : vector<16x16xf32>, vector<16x32xf32>, vector<16x32xf32> -> vector<16x32xf32>
      %162 = arith.addf %160, %161 : vector<16x32xf32>
      %c1_i32_70 = arith.constant 1 : i32
      %163 = vector.broadcast %158 : vector<16x1xf32> to vector<16x32xf32>
      %164 = arith.divf %162, %163 : vector<16x32xf32>
      %c0_71 = arith.constant 0 : index
      %c96_72 = arith.constant 96 : index
      %165 = vector.load %arg18[%c0_71, %c96_72] : memref<16x128xf32, #tpu.memory_space<vmem>>, vector<16x32xf32>
      tpu.vector_store %arg18[%c0_71, %c96_72], %164 {strides = array<i32>} : memref<16x128xf32, #tpu.memory_space<vmem>>, vector<16x32xf32>,
      %c0_73 = arith.constant 0 : index
      %c0_74 = arith.constant 0 : index
      %166 = vector.load %arg18[%c0_73, %c0_74] : memref<16x128xf32, #tpu.memory_space<vmem>>, vector<16x128xf32>
      %c0_75 = arith.constant 0 : index
      %c0_76 = arith.constant 0 : index
      %167 = vector.load %arg8[%c0_75, %c0_76] : memref<128x128xf32, #tpu.memory_space<vmem>>, vector<128x128xf32>
      %cst_77 = arith.constant dense<0.000000e+00> : vector<16x128xf32>
      %168 = tpu.matmul %166, %167, %cst_77 {dimension_numbers = #tpu.dot_dimension_numbers<[1], [0], [0], [1], [0, 0, 1, 1], [], []>} : vector<16x128xf32>, vector<128x128xf32>, vector<16x128xf32> -> vector<16x128xf32>
      %c0_78 = arith.constant 0 : index
      %169 = arith.index_cast %33 : i32 to index
      %c0_79 = arith.constant 0 : index
      %170 = vector.load %arg3[%c0_78, %169, %c0_79] : memref<1x16x128xf32, #tpu.memory_space<vmem>>, vector<1x16x128xf32>
      %171 = vector.shape_cast %170 : vector<1x16x128xf32> to vector<16x128xf32>
      %172 = arith.addf %171, %168 : vector<16x128xf32>
      %c0_80 = arith.constant 0 : index
      %c0_81 = arith.constant 0 : index
      %173 = vector.load %arg9[%c0_80, %c0_81] : memref<1x128xf32, #tpu.memory_space<vmem>>, vector<1x128xf32>
      %174 = vector.shape_cast %173 : vector<1x128xf32> to vector<128xf32>
      %175 = vector.shape_cast %174 : vector<128xf32> to vector<1x128xf32>
      %176 = vector.broadcast %175 : vector<1x128xf32> to vector<16x128xf32>
      %177 = arith.addf %172, %176 : vector<16x128xf32>
      %c0_82 = arith.constant 0 : index
      %c0_83 = arith.constant 0 : index
      %178 = vector.load %arg19[%c0_82, %c0_83] : memref<16x128xf32, #tpu.memory_space<vmem>>, vector<16x128xf32>
      tpu.vector_store %arg19[%c0_82, %c0_83], %177 {strides = array<i32>} : memref<16x128xf32, #tpu.memory_space<vmem>>, vector<16x128xf32>,
      %c0_84 = arith.constant 0 : index
      %c0_85 = arith.constant 0 : index
      %179 = vector.load %arg10[%c0_84, %c0_85] : memref<1x128xf32, #tpu.memory_space<vmem>>, vector<1x128xf32>
      %180 = vector.shape_cast %179 : vector<1x128xf32> to vector<128xf32>
      %c0_86 = arith.constant 0 : index
      %c0_87 = arith.constant 0 : index
      %181 = vector.load %arg11[%c0_86, %c0_87] : memref<1x128xf32, #tpu.memory_space<vmem>>, vector<1x128xf32>
      %182 = vector.shape_cast %181 : vector<1x128xf32> to vector<128xf32>
      %cst_88 = arith.constant dense<0.000000e+00> : vector<16xf32>
      %183 = vector.multi_reduction <add>, %177, %cst_88 [1] : vector<16x128xf32> to vector<16xf32>
      %184 = vector.shape_cast %183 : vector<16xf32> to vector<16x1xf32>
      %cst_89 = arith.constant 1.280000e+02 : f32
      %185 = vector.broadcast %cst_89 : f32 to vector<16x1xf32>
      %186 = arith.divf %184, %185 : vector<16x1xf32>
      %187 = vector.broadcast %186 : vector<16x1xf32> to vector<16x128xf32>
      %188 = arith.subf %177, %187 : vector<16x128xf32>
      %189 = arith.mulf %188, %188 : vector<16x128xf32>
      %cst_90 = arith.constant dense<0.000000e+00> : vector<16xf32>
      %190 = vector.multi_reduction <add>, %189, %cst_90 [1] : vector<16x128xf32> to vector<16xf32>
      %191 = vector.shape_cast %190 : vector<16xf32> to vector<16x1xf32>
      %cst_91 = arith.constant 1.280000e+02 : f32
      %192 = vector.broadcast %cst_91 : f32 to vector<16x1xf32>
      %193 = arith.divf %191, %192 : vector<16x1xf32>
      %194 = vector.broadcast %186 : vector<16x1xf32> to vector<16x128xf32>
      %195 = arith.subf %177, %194 : vector<16x128xf32>
      %cst_92 = arith.constant 9.99999974E-6 : f32
      %196 = vector.broadcast %cst_92 : f32 to vector<16x1xf32>
      %197 = arith.addf %193, %196 : vector<16x1xf32>
      %198 = math.rsqrt %197 : vector<16x1xf32>
      %199 = vector.broadcast %198 : vector<16x1xf32> to vector<16x128xf32>
      %200 = arith.mulf %195, %199 : vector<16x128xf32>
      %201 = vector.shape_cast %180 : vector<128xf32> to vector<1x128xf32>
      %202 = vector.broadcast %201 : vector<1x128xf32> to vector<16x128xf32>
      %203 = arith.mulf %200, %202 : vector<16x128xf32>
      %204 = vector.shape_cast %182 : vector<128xf32> to vector<1x128xf32>
      %205 = vector.broadcast %204 : vector<1x128xf32> to vector<16x128xf32>
      %206 = arith.addf %203, %205 : vector<16x128xf32>
      %c0_93 = arith.constant 0 : index
      %c0_94 = arith.constant 0 : index
      %207 = vector.load %arg20[%c0_93, %c0_94] : memref<16x128xf32, #tpu.memory_space<vmem>>, vector<16x128xf32>
      tpu.vector_store %arg20[%c0_93, %c0_94], %206 {strides = array<i32>} : memref<16x128xf32, #tpu.memory_space<vmem>>, vector<16x128xf32>,
      %cst_95 = arith.constant 0.000000e+00 : f32
      %208 = vector.broadcast %cst_95 : f32 to vector<16x128xf32>
      %c0_96 = arith.constant 0 : index
      %c0_97 = arith.constant 0 : index
      %209 = vector.load %arg21[%c0_96, %c0_97] : memref<16x128xf32, #tpu.memory_space<vmem>>, vector<16x128xf32>
      tpu.vector_store %arg21[%c0_96, %c0_97], %208 {strides = array<i32>} : memref<16x128xf32, #tpu.memory_space<vmem>>, vector<16x128xf32>,
    } else {
    }
    %c0 = arith.constant 0 : index
    %c0_4 = arith.constant 0 : index
    %8 = vector.load %arg20[%c0, %c0_4] : memref<16x128xf32, #tpu.memory_space<vmem>>, vector<16x128xf32>
    %c0_5 = arith.constant 0 : index
    %c0_6 = arith.constant 0 : index
    %9 = vector.load %arg12[%c0_5, %c0_6] : memref<128x512xf32, #tpu.memory_space<vmem>>, vector<128x512xf32>
    %cst = arith.constant dense<0.000000e+00> : vector<16x512xf32>
    %10 = tpu.matmul %8, %9, %cst {dimension_numbers = #tpu.dot_dimension_numbers<[1], [0], [0], [1], [0, 0, 1, 1], [], []>} : vector<16x128xf32>, vector<128x512xf32>, vector<16x512xf32> -> vector<16x512xf32>
    %c0_7 = arith.constant 0 : index
    %c0_8 = arith.constant 0 : index
    %11 = vector.load %arg13[%c0_7, %c0_8] : memref<1x512xf32, #tpu.memory_space<vmem>>, vector<1x512xf32>
    %12 = vector.shape_cast %11 : vector<1x512xf32> to vector<512xf32>
    %13 = vector.shape_cast %12 : vector<512xf32> to vector<1x512xf32>
    %14 = vector.broadcast %13 : vector<1x512xf32> to vector<16x512xf32>
    %15 = arith.addf %10, %14 : vector<16x512xf32>
    %cst_9 = arith.constant 5.000000e-01 : f32
    %16 = vector.broadcast %cst_9 : f32 to vector<16x512xf32>
    %17 = arith.mulf %16, %15 : vector<16x512xf32>
    %cst_10 = arith.constant 0.707106769 : f32
    %18 = vector.broadcast %cst_10 : f32 to vector<16x512xf32>
    %19 = arith.mulf %15, %18 : vector<16x512xf32>
    %20 = math.erf %19 : vector<16x512xf32>
    %cst_11 = arith.constant 1.000000e+00 : f32
    %21 = vector.broadcast %cst_11 : f32 to vector<16x512xf32>
    %22 = arith.addf %21, %20 : vector<16x512xf32>
    %23 = arith.mulf %17, %22 : vector<16x512xf32>
    %c0_12 = arith.constant 0 : index
    %c0_13 = arith.constant 0 : index
    %24 = vector.load %arg21[%c0_12, %c0_13] : memref<16x128xf32, #tpu.memory_space<vmem>>, vector<16x128xf32>
    %c0_14 = arith.constant 0 : index
    %c0_15 = arith.constant 0 : index
    %25 = vector.load %arg14[%c0_14, %c0_15] : memref<512x128xf32, #tpu.memory_space<vmem>>, vector<512x128xf32>
    %cst_16 = arith.constant dense<0.000000e+00> : vector<16x128xf32>
    %26 = tpu.matmul %23, %25, %cst_16 {dimension_numbers = #tpu.dot_dimension_numbers<[1], [0], [0], [1], [0, 0, 1, 1], [], []>} : vector<16x512xf32>, vector<512x128xf32>, vector<16x128xf32> -> vector<16x128xf32>
    %27 = arith.addf %24, %26 : vector<16x128xf32>
    %c0_17 = arith.constant 0 : index
    %c0_18 = arith.constant 0 : index
    %28 = vector.load %arg21[%c0_17, %c0_18] : memref<16x128xf32, #tpu.memory_space<vmem>>, vector<16x128xf32>
    tpu.vector_store %arg21[%c0_17, %c0_18], %27 {strides = array<i32>} : memref<16x128xf32, #tpu.memory_space<vmem>>, vector<16x128xf32>,
    %c0_i32_19 = arith.constant 0 : i32
    %29 = arith.cmpi eq, %arg2, %c0_i32_19 : i32
    %30 = arith.extui %29 : i1 to i32
    %c0_i32_20 = arith.constant 0 : i32
    %31 = arith.cmpi ne, %30, %c0_i32_20 : i32
    scf.if %31 {
      %c0_21 = arith.constant 0 : index
      %c0_22 = arith.constant 0 : index
      %32 = vector.load %arg19[%c0_21, %c0_22] : memref<16x128xf32, #tpu.memory_space<vmem>>, vector<16x128xf32>
      %c0_23 = arith.constant 0 : index
      %c0_24 = arith.constant 0 : index
      %33 = vector.load %arg21[%c0_23, %c0_24] : memref<16x128xf32, #tpu.memory_space<vmem>>, vector<16x128xf32>
      %34 = arith.addf %32, %33 : vector<16x128xf32>
      %c0_25 = arith.constant 0 : index
      %c0_26 = arith.constant 0 : index
      %35 = vector.load %arg15[%c0_25, %c0_26] : memref<1x128xf32, #tpu.memory_space<vmem>>, vector<1x128xf32>
      %36 = vector.shape_cast %35 : vector<1x128xf32> to vector<128xf32>
      %37 = vector.shape_cast %36 : vector<128xf32> to vector<1x128xf32>
      %38 = vector.broadcast %37 : vector<1x128xf32> to vector<16x128xf32>
      %39 = arith.addf %34, %38 : vector<16x128xf32>
      %c0_27 = arith.constant 0 : index
      %c0_28 = arith.constant 0 : index
      %c0_29 = arith.constant 0 : index
      %40 = vector.load %arg16[%c0_27, %c0_28, %c0_29] : memref<1x16x128xf32, #tpu.memory_space<vmem>>, vector<1x16x128xf32>
      %41 = vector.shape_cast %40 : vector<1x16x128xf32> to vector<16x128xf32>
      %42 = vector.shape_cast %39 : vector<16x128xf32> to vector<1x16x128xf32>
      tpu.vector_store %arg16[%c0_27, %c0_28, %c0_29], %42 {strides = array<i32>} : memref<1x16x128xf32, #tpu.memory_space<vmem>>, vector<1x16x128xf32>,
    } else {
    }
    return
  }
  func.func @transform_0(%arg0: i32, %arg1: i32, %arg2: i32) -> (i32, i32, i32) {
    %c0_i32 = arith.constant 0 : i32
    %c0_i32_0 = arith.constant 0 : i32
    %c0_i32_1 = arith.constant 0 : i32
    return %arg0, %c0_i32, %c0_i32_0 : i32, i32, i32
  }
  func.func @transform_1(%arg0: i32, %arg1: i32, %arg2: i32) -> (i32, i32) {
    %c0_i32 = arith.constant 0 : i32
    %c0_i32_0 = arith.constant 0 : i32
    %c0_i32_1 = arith.constant 0 : i32
    return %c0_i32, %c0_i32_0 : i32, i32
  }
  func.func @transform_2(%arg0: i32, %arg1: i32, %arg2: i32) -> (i32, i32) {
    %c0_i32 = arith.constant 0 : i32
    %c0_i32_0 = arith.constant 0 : i32
    %c0_i32_1 = arith.constant 0 : i32
    return %c0_i32, %c0_i32_0 : i32, i32
  }
  func.func @transform_3(%arg0: i32, %arg1: i32, %arg2: i32) -> (i32, i32) {
    %c0_i32 = arith.constant 0 : i32
    %c0_i32_0 = arith.constant 0 : i32
    %c0_i32_1 = arith.constant 0 : i32
    return %c0_i32, %c0_i32_0 : i32, i32
  }
  func.func @transform_4(%arg0: i32, %arg1: i32, %arg2: i32) -> (i32, i32) {
    %c0_i32 = arith.constant 0 : i32
    %c0_i32_0 = arith.constant 0 : i32
    %c0_i32_1 = arith.constant 0 : i32
    return %c0_i32, %c0_i32_0 : i32, i32
  }
  func.func @transform_5(%arg0: i32, %arg1: i32, %arg2: i32) -> (i32, i32) {
    %c0_i32 = arith.constant 0 : i32
    %c0_i32_0 = arith.constant 0 : i32
    %c0_i32_1 = arith.constant 0 : i32
    return %c0_i32, %c0_i32_0 : i32, i32
  }
  func.func @transform_6(%arg0: i32, %arg1: i32, %arg2: i32) -> (i32, i32) {
    %c0_i32 = arith.constant 0 : i32
    %c0_i32_0 = arith.constant 0 : i32
    %c0_i32_1 = arith.constant 0 : i32
    return %c0_i32, %c0_i32_0 : i32, i32
  }
  func.func @transform_7(%arg0: i32, %arg1: i32, %arg2: i32) -> (i32, i32) {
    %c0_i32 = arith.constant 0 : i32
    %c0_i32_0 = arith.constant 0 : i32
    %c0_i32_1 = arith.constant 0 : i32
    return %c0_i32, %c0_i32_0 : i32, i32
  }
  func.func @transform_8(%arg0: i32, %arg1: i32, %arg2: i32) -> (i32, i32) {
    %c0_i32 = arith.constant 0 : i32
    %c0_i32_0 = arith.constant 0 : i32
    %c0_i32_1 = arith.constant 0 : i32
    return %c0_i32, %c0_i32_0 : i32, i32
  }
  func.func @transform_9(%arg0: i32, %arg1: i32, %arg2: i32) -> (i32, i32) {
    %c0_i32 = arith.constant 0 : i32
    %c0_i32_0 = arith.constant 0 : i32
    return %c0_i32, %arg2 : i32, i32
  }
  func.func @transform_10(%arg0: i32, %arg1: i32, %arg2: i32) -> (i32, i32) {
    %c0_i32 = arith.constant 0 : i32
    %c0_i32_0 = arith.constant 0 : i32
    return %c0_i32, %arg2 : i32, i32
  }
  func.func @transform_11(%arg0: i32, %arg1: i32, %arg2: i32) -> (i32, i32) {
    %c0_i32 = arith.constant 0 : i32
    %c0_i32_0 = arith.constant 0 : i32
    return %arg2, %c0_i32 : i32, i32
  }
  func.func @transform_12(%arg0: i32, %arg1: i32, %arg2: i32) -> (i32, i32) {
    %c0_i32 = arith.constant 0 : i32
    %c0_i32_0 = arith.constant 0 : i32
    %c0_i32_1 = arith.constant 0 : i32
    return %c0_i32, %c0_i32_0 : i32, i32
  }
  func.func @transform_13(%arg0: i32, %arg1: i32, %arg2: i32) -> (i32, i32, i32) {
    %c0_i32 = arith.constant 0 : i32
    %c0_i32_0 = arith.constant 0 : i32
    return %arg0, %arg1, %c0_i32 : i32, i32, i32
  }
}

</mosaic_0001>

<bundles_post_ra>
// kernel: tpu_custom_call.1
= control target key start
LH: loop header
LB: loop body
LE: loop exit
PB: predicated region body
PF: predicated region fallthrough
CT: control target
= control target key end

     0   :  { %s4057_s0 = inlined_call_operand.hbm [shape: f32[2,16,128], index: 0, kind: input, shape index: {}]   ;;  %s4058_s1 = inlined_call_operand.hbm [shape: f32[1,128], index: 1, kind: input, shape index: {}]   ;;  %s4059_s2 = inlined_call_operand.hbm [shape: f32[1,128], index: 2, kind: input, shape index: {}]   ;;  %s4060_s3 = inlined_call_operand.hbm [shape: f32[128,384], index: 3, kind: input, shape index: {}]   ;;  %s4061_s4 = inlined_call_operand.vmem [shape: f32[1,384], index: 4, kind: input, shape index: {}]   ;;  %s4062_s5 = inlined_call_operand.hbm [shape: f32[128,128], index: 5, kind: input, shape index: {}]   ;;  %s4063_s6 = inlined_call_operand.vmem [shape: f32[1,128], index: 6, kind: input, shape index: {}]   ;;  %s4064_s7 = inlined_call_operand.vmem [shape: f32[1,128], index: 7, kind: input, shape index: {}]   ;;  %s4065_s8 = inlined_call_operand.vmem [shape: f32[1,128], index: 8, kind: input, shape index: {}]   ;;  %s4066_s9 = inlined_call_operand.hbm [shape: f32[128,512], index: 9, kind: input, shape index: {}]   ;;  %s4067_s10 = inlined_call_operand.vmem [shape: f32[1,512], index: 10, kind: input, shape index: {}]   ;;  %s4068_s11 = inlined_call_operand.hbm [shape: f32[512,128], index: 11, kind: input, shape index: {}]   ;;  %s4069_s12 = inlined_call_operand.vmem [shape: f32[1,128], index: 12, kind: input, shape index: {}]   ;;  %s4070_s13 = inlined_call_operand.hbm [shape: f32[2,16,128], index: 13, kind: output, shape index: {}]  }
   0x1   :  { %4079 = sst [smem:[#allocation27_spill]] %s4058_s1 }
   0x2   :  { %4080 = sst [smem:[#allocation28_spill]] %s4059_s2 }
   0x3   :  { %4081 = sst [smem:[#allocation29_spill]] %s4060_s3 }
   0x4   :  { %4082 = sst [smem:[#allocation30_spill]] %s4062_s5 }
   0x5   :  { %4083 = sst [smem:[#allocation31_spill]] %s4066_s9 }
   0x6   :  { %4084 = sst [smem:[#allocation32_spill]] %s4068_s11 }
   0x7   :  { %4085 = sst [smem:[#allocation33_spill]] %s4069_s12 }
   0x8   :  { %4086 = sst [smem:[#allocation34_spill]] %s4070_s13 }
   0x9   :  { %18 = vsyncpa [#allocation8], 0 }
   0xa   :  { %20 = vsyncpa [#allocation8 + $0x1], 0 }
   0xb   :  { %21 = vsyncpa [#allocation11], 0 }
   0xc   :  { %22 = vsyncpa [#allocation14], 0 }
   0xd   :  { %23 = vsyncpa [#allocation17], 0 }
   0xe   :  { %24 = vsyncpa [#allocation9], 0 }
   0xf   :  { %26 = vsyncpa [#allocation9 + $0x1], 0  ;;  %s3573_s25 = smov 0   ;;  %s3575_s26 = smov 0  }
  0x10   :  { %s3577_s27 = smov 0   ;;  %s3579_s28 = smov 0  }
  0x11   :  { %s3581_s29 = smov 0   ;;  %s3583_s30 = smov 0  }
  0x12 LB: > { %4087 = sst [smem:[#allocation25_spill]] %s3473_s28  ;;  %s4071_s14 = sadd.s32 4294967295, %s3481_s30   ;;  %s3481_s30 = sphi %s3583_s30, %s32_s30   ;;  %s3477_s29 = sphi %s3581_s29, %s4119_s29   ;;  %s3473_s28 = sphi %s3579_s28, %s4118_s28   ;;  %s3469_s27 = sphi %s3577_s27, %s4117_s27   ;;  %s3465_s26 = sphi %s3575_s26, %s4116_s26   ;;  %s3461_s25 = sphi %s3573_s25, %s4115_s25  }
  0x13   : > { %p2668_p0 = scmp.ge.s32.totalorder %s3481_s30, 1  ;;  %p3607_p1 = scmp.eq.s32.totalorder %s4071_s14, 0 }
  0x14   : > { %p377_p2 = scmp.lt.s32.totalorder %s3481_s30, 3  ;;  %s3483_s17 = smov [#allocation10]  }
  0x15   : > { %s4088_s15 = scalar_select %p3607_p1, 1, 0 }
  0x16   : > { %p3612_p3 = pnand %p2668_p0, %p377_p2  ;;  %s390_s18 = sshll.u32 %s3483_s17, 4  ;;  %s391_s18 = int_to_ptr.vmem [resolvable:$true] %s390_s18 }
  0x17   : > { %s3484_s19 = smov [#allocation13]   ;;  %s3485_s22 = smov [#allocation16]  }
  0x18   : > { %s4089_s16 = scalar_select %p3612_p3, 1, 0 }
  0x19   : > { %p3024_p5 = pneg %p3612_p3  ;;  %s411_s20 = sshll.u32 %s3484_s19, 4  ;;  %s3625_s20 = int_to_ptr.vmem [resolvable:$true] %s411_s20 }
  0x1a   : > { %s452_s23 = sshll.u32 %s3485_s22, 4  ;;  %s3216_s17 = scalar_lea.vmem %s391_s18, 16  ;;  %s453_s23 = int_to_ptr.vmem [resolvable:$true] %s452_s23 }
  0x1b   : > { %p3621_p6 = pnand %p3024_p5, %p3607_p1  ;;  %p3217_p8 = scmp.ne.s32.totalorder %s391_s18, %s3216_s17 }
  0x1c   : > { %s3223_s19 = scalar_lea.vmem %s391_s18, 32  ;;  %p3224_p11 = scmp.lt.s32.totalorder %s391_s18, %s391_s18 }
  0x1d   : > { %p3629_p7 = pneg %p3621_p6  ;;  %p3225_p12 = scmp.lt.s32.totalorder %s3223_s19, %s3216_s17 }
  0x1f   : > { %p3219_p9 = pnand %p3217_p8, %p3629_p7  ;;  %p3226_p13 = por %p3225_p12, %p3224_p11 }
  0x21   : > { %p3220_p10 = pneg %p3219_p9 }
  0x23   : > { %p3227_p0 = pnand %p3226_p13, %p3220_p10 }
  0x25   : > { %3230 = shalt.err (!%p3227_p0)
}
  0x26   : > { %s4092_s1 = sld [smem:[#allocation27_spill]]  ;;  %s3242_s13 = scalar_lea.vmem %s3625_s20, 6144 }
  0x27   : > { %p3243_p2 = scmp.ne.s32.totalorder %s3625_s20, %s3242_s13  ;;  %p3250_p9 = scmp.lt.s32.totalorder %s3625_s20, %s3625_s20 }
  0x28   : > { %p3251_p11 = scmp.lt.s32.totalorder %s3242_s13, %s3242_s13 }
  0x29   : > { %p3245_p5 = pnand %p3243_p2, %p3629_p7 }
  0x2a   : > { %p3252_p10 = por %p3251_p11, %p3250_p9 }
  0x2b   : > { %p3246_p8 = pneg %p3245_p5 }
  0x2c   : > { %3027 = dma.hbm_to_vmem [thread:$0]  (!%p3621_p6), %s4092_s1, 16, %s391_s18, [#allocation11]  }
  0x2d   : > { %p3253_p12 = pnand %p3252_p10, %p3246_p8 }
  0x2f   : > { %3256 = shalt.err (!%p3253_p12)
}
  0x30   : > { %s3486_s17 = smov 384   ;;  %s3487_s14 = smov 24  }
  0x31   : > { %s4093_s3 = sld [smem:[#allocation29_spill]]  ;;  %s3268_s18 = scalar_lea.vmem %s453_s23, 8192 }
  0x32   : > { %p3269_p13 = scmp.ne.s32.totalorder %s453_s23, %s3268_s18  ;;  %p3276_p5 = scmp.lt.s32.totalorder %s453_s23, %s453_s23 }
  0x33   : > { %p3277_p9 = scmp.lt.s32.totalorder %s3268_s18, %s3268_s18 }
  0x34   : > { %p3271_p0 = pnand %p3269_p13, %p3629_p7 }
  0x35   : > { %p3278_p8 = por %p3277_p9, %p3276_p5 }
  0x36   : > { %p3272_p2 = pneg %p3271_p0 }
  0x37   : > { %3033 = dma.hbm_to_vmem [thread:$0]  (!%p3621_p6), %s4093_s3, 6144, %s3625_s20, [#allocation14], %s3486_s17, %s3486_s17, %s3487_s14  }
  0x38   : > { %p3279_p11 = pnand %p3278_p8, %p3272_p2 }
  0x3a   : > { %3282 = shalt.err (!%p3279_p11)
}
  0x3b   : > { %s3488_s13 = smov 512   ;;  %s3489_s1 = smov 32  }
  0x3c   : > { %s4094_s9 = sld [smem:[#allocation31_spill]]  ;;  %s3490_s20 = smov [#allocation12]  }
  0x3d   : > { %s401_s17 = sshll.u32 %s3490_s20, 4  ;;  %s3491_s14 = smov [#allocation15]   ;;  %s402_s17 = int_to_ptr.vmem [resolvable:$true] %s401_s17 }
  0x3e   : > { %s427_s19 = sshll.u32 %s3491_s14, 4  ;;  %s3294_s22 = scalar_lea.vmem %s402_s17, 16  ;;  %s428_s19 = int_to_ptr.vmem [resolvable:$true] %s427_s19 }
  0x3f   : > { %p3295_p10 = scmp.ne.s32.totalorder %s402_s17, %s3294_s22  ;;  %s3301_s18 = scalar_lea.vmem %s402_s17, 32 }
  0x40   : > { %p3302_p0 = scmp.lt.s32.totalorder %s402_s17, %s402_s17  ;;  %p3303_p2 = scmp.lt.s32.totalorder %s3301_s18, %s3294_s22 }
  0x41   : > { %p3297_p12 = pnand %p3295_p10, %p3629_p7 }
  0x42   : > { %3039 = dma.hbm_to_vmem [thread:$0]  (!%p3621_p6), %s4094_s9, 8192, %s453_s23, [#allocation17], %s3488_s13, %s3488_s13, %s3489_s1  }
  0x43   : > { %p3298_p13 = pneg %p3297_p12  ;;  %p3304_p5 = por %p3303_p2, %p3302_p0 }
  0x45   : > { %p3305_p9 = pnand %p3304_p5, %p3298_p13 }
  0x47   : > { %3308 = shalt.err (!%p3305_p9)
}
  0x48   : > { %s4095_s2 = sld [smem:[#allocation28_spill]]  ;;  %s3320_s28 = scalar_lea.vmem %s428_s19, 2048 }
  0x49   : > { %p3321_p8 = scmp.ne.s32.totalorder %s428_s19, %s3320_s28  ;;  %p3328_p12 = scmp.lt.s32.totalorder %s428_s19, %s428_s19 }
  0x4a   : > { %p3329_p4 = scmp.lt.s32.totalorder %s3320_s28, %s3320_s28 }
  0x4b   : > { %p3323_p11 = pnand %p3321_p8, %p3629_p7 }
  0x4c   : > { %p3330_p3 = por %p3329_p4, %p3328_p12 }
  0x4d   : > { %p3324_p10 = pneg %p3323_p11 }
  0x4e   : > { %3030 = dma.hbm_to_vmem [thread:$0]  (!%p3621_p6), %s4095_s2, 16, %s402_s17, [#allocation11]  }
  0x4f   : > { %p3331_p1 = pnand %p3330_p3, %p3324_p10 }
  0x51   : > { %3334 = shalt.err (!%p3331_p1)
}
  0x52   : > { %s4076_s23 = smov 128   ;;  %s4077_s13 = smov 8  }
  0x53   : > { %s4096_s5 = sld [smem:[#allocation30_spill]]  ;;  %s3494_s14 = smov [#allocation18]  }
  0x54   : > { %s476_s22 = sshll.u32 %s3494_s14, 4  ;;  %s477_s22 = int_to_ptr.vmem [resolvable:$true] %s476_s22 }
  0x55   : > { %s3346_s18 = scalar_lea.vmem %s477_s22, 8192  ;;  %p3354_p4 = scmp.lt.s32.totalorder %s477_s22, %s477_s22 }
  0x56   : > { %p3347_p13 = scmp.ne.s32.totalorder %s477_s22, %s3346_s18  ;;  %p3355_p0 = scmp.lt.s32.totalorder %s3346_s18, %s3346_s18 }
  0x58   : > { %p3349_p3 = pnand %p3347_p13, %p3629_p7  ;;  %p3356_p2 = por %p3355_p0, %p3354_p4 }
  0x59   : > { %3036 = dma.hbm_to_vmem [thread:$0]  (!%p3621_p6), %s4096_s5, 2048, %s428_s19, [#allocation14], %s4076_s23, %s4076_s23, %s4077_s13  }
  0x5a   : > { %p3350_p1 = pneg %p3349_p3 }
  0x5c   : > { %p3357_p5 = pnand %p3356_p2, %p3350_p1 }
  0x5e   : > { %3360 = shalt.err (!%p3357_p5)
}
  0x5f   : > { %s4097_s11 = sld [smem:[#allocation32_spill]]  ;;  %s2667_s21 = sadd.s32 4294967294, %s3481_s30  }
  0x60   : > { %s51_s24 = sadd.s32 1, %s3477_s29  ;;  %s58_s1 = sadd.s32 1, %s3469_s27 }
  0x61   : > { %p53_p7 = scmp.ge.s32.totalorder %s51_s24, 2  ;;  %p65_p9 = scmp.ne.s32.totalorder %s3469_s27, %s3465_s26 }
  0x62   : > { %p66_p8 = scmp.eq.s32.totalorder %s3481_s30, 0  ;;  %p71_p10 = scmp.ne.s32.totalorder %s3465_s26, %s3461_s25 }
  0x63   : > { %s4121_s24 = smov (%p53_p7, %s51_s24), 0  ;;  %s4100_s17 = sadd.s32 4294967295, %s3481_s30  }
  0x64   : > { %4098 = sst [smem:[#allocation26_spill]] %s4121_s24  ;;  %p3694_p11 = por %p66_p8, %p65_p9 }
  0x65   : > { %3042 = dma.hbm_to_vmem [thread:$0]  (!%p3621_p6), %s4097_s11, 8192, %s477_s22, [#allocation17], %s4076_s23, %s4076_s23, %s4077_s13  }
  0x66   : > { %s55_s20 = ssub.s32 %s3477_s29, %s4121_s24  ;;  %p364_p6 = scmp.eq.s32.totalorder %s4100_s17, 1 }
  0x67   : > { %p56_p12 = scmp.eq.s32.totalorder %s55_s20, 0  ;;  %p4101_p13 = scmp.ne.s32.totalorder %s4088_s15, 0 }
  0x68   : > { %p3710_p1 = por %p364_p6, %p65_p9  ;;  %p370_p4 = scmp.eq.s32.totalorder %s2667_s21, 1 }
  0x69   : > { %p3706_p3 = por %p4101_p13, %p71_p10  ;;  %p3057_p2 = scmp.lt.s32.totalorder %s3481_s30, 2 }
  0x6a   : > { %s3715_s18 = scalar_select %p56_p12, %s3469_s27, %s58_s1  }
  0x6b   : > { %p3717_p0 = por %p370_p4, %p71_p10  ;;  %s493_s19 = sand.u32 1, %s3469_s27  }
  0x6c   : > { %s2724_s17 = sshll.u32 %s3477_s29, 8  ;;  %s2677_s20 = sshll.u32 %s493_s19, 4 }
  0x6d   : > { %s503_s2 = scalar_lea.hbm %s4057_s0, %s2724_s17  ;;  %s497_s3 = scalar_lea.vmem [#allocation7], %s2677_s20 }
  0x6e   : > { %s504_s5 = sshll.u32 %s497_s3, 4  ;;  %p3729_p5 = pnand %p3057_p2, %p3694_p11  ;;  %s505_s5 = int_to_ptr.vmem [resolvable:$true] %s504_s5 }
  0x6f   : > { %s494_s21 = scalar_lea.sflag [#allocation8], %s493_s19  ;;  %s3374_s1 = scalar_lea.vmem %s505_s5, 256 }
  0x70   : > { %p3363_p7 = pneg %p3729_p5  ;;  %p3375_p9 = scmp.ne.s32.totalorder %s505_s5, %s3374_s1 }
  0x71   : > { %s3495_s11 = smov [#allocation7]  }
  0x72   : > { %p3377_p8 = pnand %p3375_p9, %p3363_p7  ;;  %s3379_s24 = sshll.u32 %s3495_s11, 4  ;;  %s3380_s24 = int_to_ptr.vmem [resolvable:$false] %s3379_s24 }
  0x73   : > { %s3381_s23 = scalar_lea.vmem %s3380_s24, 512  ;;  %p3382_p6 = scmp.lt.s32.totalorder %s505_s5, %s3380_s24 }
  0x74   : > { %p3378_p10 = pneg %p3377_p8  ;;  %p3383_p12 = scmp.lt.s32.totalorder %s3381_s23, %s3374_s1 }
  0x76   : > { %p3384_p13 = por %p3383_p12, %p3382_p6 }
  0x78   : > { %p3385_p11 = pnand %p3384_p13, %p3378_p10 }
  0x7a   : > { %3388 = shalt.err (!%p3385_p11)
}
  0x7b   : > { %s4106_s3 = smov 8   ;;  %s4107_s13 = smov 128  }
  0x7c   : > { %3046 = dma.hbm_to_vmem [thread:$0]  (!%p3729_p5), %s503_s2, 256, %s505_s5, %s494_s21, %s4107_s13, %s4107_s13, %s4106_s3  }
  0x7d   : > { %p4108_p4 = scmp.ne.s32.totalorder %s4089_s16, 0 }
  0x7e   : > { %s3743_s28 = sand.u32 (!%p4108_p4), 1, %s3465_s26  }
  0x7f   : > { %516 = sbr.rel (%p4108_p4) target bundleno = 3016 (0xbc8), region = 72  ;;  %s2681_s11 = sshll.u32 (!%p4108_p4), %s3743_s28, 4 }
  0x80   : > { %s519_s24 = scalar_lea.sflag (!%p4108_p4), [#allocation8], %s3743_s28  ;;  %s3749_s19 = scalar_lea.vmem (!%p4108_p4), [#allocation7], %s2681_s11 }
  0x84   : > { %3440 = dma.done.wait (%p3706_p3), %s519_s24, 256  }
  0x85   : > { %3442 = vsyncadd (%p3706_p3), %s519_s24, 4294967040  ;;  %p4109_p2 = scmp.ne.s32.totalorder %s4088_s15, 0 }
  0x87   : > { %3444 = dma.done.wait (%p4109_p2), [#allocation11], 32  }
  0x88   : > { %3446 = vsyncadd (%p4109_p2), [#allocation11], 4294967264 }
  0x89   : > { %3448 = dma.done.wait (%p4109_p2), [#allocation14], 8192  }
  0x8a   : > { %3450 = vsyncadd (%p4109_p2), [#allocation14], 4294959104 }
  0x8b   : > { %3452 = dma.done.wait (%p4109_p2), [#allocation17], 16384  }
  0x8c   : > { %3454 = vsyncadd (%p4109_p2), [#allocation17], 4294950912  ;;  %v607_v0 = vld [vmem:[%s3749_s19] sm:$0xff]  ;;  %v608_v1 = vld [vmem:[%s3749_s19 + $0x8] sm:$0xff]  ;;  %v3496_v56 = vmov 0.0   ;;  %vm891_vm0 = vcmask 261120  }
  0x8d   : > { %611 = vadd.xlane.f32.xlu0 %v607_v0  ;;  %v696_v2 = vld [vmem:[#allocation13 + $0x170] sm:$0xff]  ;;  %v695_v3 = vld [vmem:[#allocation13 + $0x168] sm:$0xff]  ;;  %v693_v4 = vld [vmem:[#allocation13 + $0x158] sm:$0xff]  ;;  %779 = vmatprep.mubr.f32.mxu0 %v3496_v56  ;;  %vm981_vm1 = vcmask 130048   ;;  %s3497_s9 = smov 96   ;;  %s3498_s15 = smov 64  }
  0x8e   : > { %715 = vmatprep.subr.mxu0 %v696_v2  ;;  %v692_v5 = vld [vmem:[#allocation13 + $0x150] sm:$0xff]  ;;  %v697_v6 = vld [vmem:[#allocation13 + $0x178] sm:$0xff]  ;;  %v690_v7 = vld [vmem:[#allocation13 + $0x140] sm:$0xff]  ;;  %s3499_s16 = smov 32   ;;  %vm1333_vm2 = vcmask 523520   ;;  %vm1570_vm3 = vcmask 785920  }
  0x8f   : > { %716 = vmatpush1.msra.mxu0 %v695_v3  ;;  %2870 = vmatprep.subr.mxu1 %v697_v6  ;;  %v694_v8 = vld [vmem:[#allocation13 + $0x160] sm:$0xff]  ;;  %v689_v9 = vld [vmem:[#allocation13 + $0x138] sm:$0xff]  ;;  %v687_v10 = vld [vmem:[#allocation13 + $0x128] sm:$0xff]  ;;  %vm1807_vm4 = vcmask 1048320   ;;  %s4110_s24 = sld [smem:[#allocation25_spill]]  ;;  %s2487_s1 = scalar_lea.sflag [#allocation9], %s3743_s28 }
  0x90   : > { %717 = vmatprep.subr.mxu0 %v693_v4  ;;  %2871 = vmatpush3.msra.mxu1 %v697_v6  ;;  %v686_v11 = vld [vmem:[#allocation13 + $0x120] sm:$0xff]  ;;  %v684_v20 = vld [vmem:[#allocation13 + $0x110] sm:$0xff]  ;;  %v691_v21 = vld [vmem:[#allocation13 + $0x148] sm:$0xff]  ;;  %s4111_s5 = sld [smem:[#allocation33_spill]]  ;;  %s3500_s23 = smov [#allocation19]  }
  0x91   : > { %613 = vadd.xlane.f32.xlu0 %v608_v1  ;;  %718 = vmatpush1.msra.mxu0 %v692_v5  ;;  %v683_v22 = vld [vmem:[#allocation13 + $0x108] sm:$0xff]  ;;  %v681_v23 = vld [vmem:[#allocation13 + $0xf8] sm:$0xff]  ;;  %v688_v24 = vld [vmem:[#allocation13 + $0x130] sm:$0xff]  ;;  %s4112_s20 = sld [smem:[#allocation34_spill]]  ;;  %s3393_s3 = sshll.u32 %s3500_s23, 4  ;;  %s3394_s3 = int_to_ptr.vmem [resolvable:$false] %s3393_s3 }
  0x92   : > { %2872 = vmatprep.subr.mxu1 %v694_v8  ;;  %719 = vmatprep.subr.mxu0 %v690_v7  ;;  %v680_v25 = vld [vmem:[#allocation13 + $0xf0] sm:$0xff]  ;;  %v678_v26 = vld [vmem:[#allocation13 + $0xe0] sm:$0xff]  ;;  %v685_v27 = vld [vmem:[#allocation13 + $0x118] sm:$0xff]  ;;  %s3395_s13 = scalar_lea.vmem %s3394_s3, 512 }
  0x93   : > { %2873 = vmatpush3.msra.mxu1 %v694_v8  ;;  %720 = vmatpush1.msra.mxu0 %v689_v9  ;;  %v677_v28 = vld [vmem:[#allocation13 + $0xd8] sm:$0xff]  ;;  %v675_v29 = vld [vmem:[#allocation13 + $0xc8] sm:$0xff]  ;;  %v682_v30 = vld [vmem:[#allocation13 + $0x100] sm:$0xff] }
  0x94   : > { %721 = vmatprep.subr.mxu0 %v687_v10  ;;  %2874 = vmatprep.subr.mxu1 %v691_v21  ;;  %v674_v31 = vld [vmem:[#allocation13 + $0xc0] sm:$0xff]  ;;  %v672_v32 = vld [vmem:[#allocation13 + $0xb0] sm:$0xff]  ;;  %v679_v33 = vld [vmem:[#allocation13 + $0xe8] sm:$0xff] }
  0x95   : > { %722 = vmatpush1.msra.mxu0 %v686_v11  ;;  %2875 = vmatpush3.msra.mxu1 %v691_v21  ;;  %v671_v34 = vld [vmem:[#allocation13 + $0xa8] sm:$0xff]  ;;  %v669_v35 = vld [vmem:[#allocation13 + $0x98] sm:$0xff]  ;;  %v676_v36 = vld [vmem:[#allocation13 + $0xd0] sm:$0xff]  ;;  %v700_v11 = vlaneseq }
  0x96   : > { %723 = vmatprep.subr.mxu0 %v684_v20  ;;  %2876 = vmatprep.subr.mxu1 %v688_v24  ;;  %v668_v37 = vld [vmem:[#allocation13 + $0x90] sm:$0xff]  ;;  %v666_v38 = vld [vmem:[#allocation13 + $0x80] sm:$0xff]  ;;  %v673_v39 = vld [vmem:[#allocation13 + $0xb8] sm:$0xff] }
  0x97   : > { %724 = vmatpush1.msra.mxu0 %v683_v22  ;;  %2877 = vmatpush3.msra.mxu1 %v688_v24  ;;  %v665_v40 = vld [vmem:[#allocation13 + $0x78] sm:$0xff]  ;;  %v663_v41 = vld [vmem:[#allocation13 + $0x68] sm:$0xff]  ;;  %v670_v42 = vld [vmem:[#allocation13 + $0xa0] sm:$0xff] }
  0x98   : > { %725 = vmatprep.subr.mxu0 %v681_v23  ;;  %2878 = vmatprep.subr.mxu1 %v685_v27  ;;  %v662_v43 = vld [vmem:[#allocation13 + $0x60] sm:$0xff]  ;;  %v660_v44 = vld [vmem:[#allocation13 + $0x50] sm:$0xff]  ;;  %v667_v45 = vld [vmem:[#allocation13 + $0x88] sm:$0xff] }
  0x99   : > { %726 = vmatpush1.msra.mxu0 %v680_v25  ;;  %2879 = vmatpush3.msra.mxu1 %v685_v27  ;;  %v659_v46 = vld [vmem:[#allocation13 + $0x48] sm:$0xff]  ;;  %v657_v47 = vld [vmem:[#allocation13 + $0x38] sm:$0xff]  ;;  %v664_v48 = vld [vmem:[#allocation13 + $0x70] sm:$0xff] }
  0x9a   : > { %727 = vmatprep.subr.mxu0 %v678_v26  ;;  %2880 = vmatprep.subr.mxu1 %v682_v30  ;;  %v656_v49 = vld [vmem:[#allocation13 + $0x30] sm:$0xff]  ;;  %v654_v50 = vld [vmem:[#allocation13 + $0x20] sm:$0xff]  ;;  %v661_v51 = vld [vmem:[#allocation13 + $0x58] sm:$0xff] }
  0x9b   : > { %728 = vmatpush1.msra.mxu0 %v677_v28  ;;  %2881 = vmatpush3.msra.mxu1 %v682_v30  ;;  %v653_v52 = vld [vmem:[#allocation13 + $0x18] sm:$0xff]  ;;  %v651_v53 = vld [vmem:[#allocation13 + $0x8] sm:$0xff]  ;;  %v658_v54 = vld [vmem:[#allocation13 + $0x40] sm:$0xff] }
  0x9c   : > { %729 = vmatprep.subr.mxu0 %v675_v29  ;;  %2882 = vmatprep.subr.mxu1 %v679_v33  ;;  %v650_v55 = vld [vmem:[#allocation13] sm:$0xff]  ;;  %v655_v57 = vld [vmem:[#allocation13 + $0x28] sm:$0xff]  ;;  %v652_v58 = vld [vmem:[#allocation13 + $0x10] sm:$0xff] }
  0x9d   : > { %730 = vmatpush1.msra.mxu0 %v674_v31  ;;  %2883 = vmatpush3.msra.mxu1 %v679_v33  ;;  %v2689_v2 = vld [vmem:[#allocation10] ss:$0 sm:$0xff]  ;;  %v2690_v4 = vld [vmem:[#allocation12] ss:$0 sm:$0xff] }
  0x9e   : > { %731 = vmatprep.subr.mxu0 %v672_v32  ;;  %2884 = vmatprep.subr.mxu1 %v676_v36 }
  0x9f   : > { %732 = vmatpush1.msra.mxu0 %v671_v34  ;;  %2885 = vmatpush3.msra.mxu1 %v676_v36 }
  0xa0   : > { %733 = vmatprep.subr.mxu0 %v669_v35  ;;  %2886 = vmatprep.subr.mxu1 %v673_v39 }
  0xa1   : > { %734 = vmatpush1.msra.mxu0 %v668_v37  ;;  %2887 = vmatpush3.msra.mxu1 %v673_v39 }
  0xa2   : > { %735 = vmatprep.subr.mxu0 %v666_v38  ;;  %2888 = vmatprep.subr.mxu1 %v670_v42 }
  0xa3   : > { %736 = vmatpush1.msra.mxu0 %v665_v40  ;;  %2889 = vmatpush3.msra.mxu1 %v670_v42 }
  0xa4   : > { %737 = vmatprep.subr.mxu0 %v663_v41  ;;  %2890 = vmatprep.subr.mxu1 %v667_v45 }
  0xa5   : > { %738 = vmatpush1.msra.mxu0 %v662_v43  ;;  %2891 = vmatpush3.msra.mxu1 %v667_v45 }
  0xa6   : > { %739 = vmatprep.subr.mxu0 %v660_v44  ;;  %2892 = vmatprep.subr.mxu1 %v664_v48 }
  0xa7   : > { %740 = vmatpush1.msra.mxu0 %v659_v46  ;;  %2893 = vmatpush3.msra.mxu1 %v664_v48 }
  0xa8   : > { %741 = vmatprep.subr.mxu0 %v657_v47  ;;  %2894 = vmatprep.subr.mxu1 %v661_v51 }
  0xa9   : > { %742 = vmatpush1.msra.mxu0 %v656_v49  ;;  %2895 = vmatpush3.msra.mxu1 %v661_v51 }
  0xaa   : > { %743 = vmatprep.subr.mxu0 %v654_v50  ;;  %2896 = vmatprep.subr.mxu1 %v658_v54 }
  0xab   : > { %744 = vmatpush1.msra.mxu0 %v653_v52  ;;  %2897 = vmatpush3.msra.mxu1 %v658_v54 }
  0xac   : > { %745 = vmatprep.subr.mxu0 %v651_v53  ;;  %2898 = vmatprep.subr.mxu1 %v655_v57 }
  0xad   : > { %746 = vmatpush1.msra.mxu0 %v650_v55  ;;  %2899 = vmatpush3.msra.mxu1 %v655_v57 }
  0xae   : > { %2900 = vmatprep.subr.mxu1 %v652_v58 }
  0xaf   : > { %2901 = vmatpush3.msra.mxu1 %v652_v58 }
 0x116   : > { %v612_v12 = vpop.xlane.xlu0 %611 }
 0x117   : > { %v616_v13 = vmul.f32 0.0078125, %v612_v12  ;;  %v3781_v12 = vshrl.u32 %v700_v11, 7 }
 0x119   : > { %v3769_v14 = vsub.f32 %v607_v0, %v616_v13  ;;  %v702_v13 = vsub.s32 0, %v3781_v12  ;;  %v710_v22 = vsub.s32 2, %v3781_v12 }
 0x11a   : > { %v614_v15 = vpop.xlane.xlu0 %613 }
 0x11b   : > { %v617_v16 = vmul.f32 0.0078125, %v614_v15  ;;  %v620_v17 = vmul.f32 %v3769_v14, %v3769_v14 }
 0x11d   : > { %v3773_v18 = vsub.f32 %v608_v1, %v617_v16  ;;  %622 = vadd.xlane.f32.xlu1 %v620_v17 }
 0x11f   : > { %v621_v19 = vmul.f32 %v3773_v18, %v3773_v18 }
 0x121   : > { %624 = vadd.xlane.f32.xlu1 %v621_v19 }
 0x1a6   : > { %v623_v59 = vpop.xlane.xlu1 %622 }
 0x1a7   : > { %v626_v60 = vmul.f32 0.0078125, %v623_v59 }
 0x1a9   : > { %v628_v61 = vadd.f32 1e-05, %v626_v60 }
 0x1aa   : > { %v625_v62 = vpop.xlane.xlu1 %624 }
 0x1ab   : > { %3131 = vrsqrt.f32 %v628_v61  ;;  %v627_v63 = vmul.f32 0.0078125, %v625_v62 }
 0x1ad   : > { %v629_v0 = vadd.f32 1e-05, %v627_v63 }
 0x1af   : > { %3133 = vrsqrt.f32 %v629_v0 }
 0x1b8   : > { %v3132_v1 = vpop.eup %3131 }
 0x1b9   : > { %v632_v3 = vmul.f32 %v3132_v1, %v3769_v14  ;;  %v698_v14 = vld [vmem:[%s4061_s4] sm:$0x7] }
 0x1ba   : > { %v703_v15 = vrot.slane %v698_v14, %v702_v13  ;;  %v711_v26 = vrot.slane %v698_v14, %v710_v22 }
 0x1bb   : > { %v640_v5 = vmul.f32 %v2689_v2, %v632_v3 }
 0x1bc   : > { %v3134_v6 = vpop.eup %3133 }
 0x1bd   : > { %v648_v7 = vadd.f32 %v2690_v4, %v640_v5  ;;  %v633_v8 = vmul.f32 %v3134_v6, %v3773_v18  ;;  %v706_v18 = vsub.s32 1, %v3781_v12 }
 0x1bf   : > { %780 = vmatmul.mubr.f32.vlgmr.msra.gmra.mxu0 %v648_v7  ;;  %2902 = vmatprep.mubr.f32.mxu1 %v648_v7  ;;  %v641_v9 = vmul.f32 %v2689_v2, %v633_v8  ;;  %v707_v21 = vrot.slane %v698_v14, %v706_v18 }
 0x1c0   : > { %785 = vmatprep.mubr.f32.mxu0 %v3496_v56 }
 0x1c1   : > { %v649_v10 = vadd.f32 %v2690_v4, %v641_v9 }
 0x1c3   : > { %786 = vmatmul.mubr.f32.gmra.mxu0 %v649_v10  ;;  %2903 = vmatmul.mubr.f32.vlgmr.msra.gmra.mxu1 %v649_v10 }
 0x27f   : > { %v781_v16 = vpop.f32.mrf.mxu0 }
 0x280   : > { %v3789_v17 = vadd.f32 %v781_v16, %v703_v15 }
 0x281   : > { %v783_v19 = vpop.f32.mrf.mxu0 }
 0x282   : > { %2909 = vmatprep.mubr.msk.f32.mxu1 %vm891_vm0, %v3789_v17  ;;  %v3799_v25 = vadd.f32 %v783_v19, %v707_v21 }
 0x283   : > { %v787_v20 = vpop.f32.mrf.mxu0  ;;  %v2904_v27 = vpop.f32.mrf.mxu1 }
 0x284   : > { %v3809_v28 = vadd.f32 %v2904_v27, %v711_v26  ;;  %v3813_v30 = vadd.f32 %v787_v20, %v703_v15 }
 0x285   : > { %v789_v23 = vpop.f32.mrf.mxu0  ;;  %v858_v29 = vpop.f32.mrf.mxu1 }
 0x286   : > { %v3797_v24 = vadd.f32 %v789_v23, %v707_v21  ;;  %v3816_v31 = vadd.f32 %v858_v29, %v711_v26 }
 0x288   : > { %2905 = vmatprep.subr.msk.mxu1 %vm891_vm0, %v3797_v24 }
 0x289   : > { %2906 = vmatpush3.xpose.msk.msra.mxu1 %vm891_vm0, %v3797_v24 }
 0x28a   : > { %2907 = vmatprep.subr.msk.mxu1 %vm891_vm0, %v3799_v25 }
 0x28d   : > { %2908 = vmatpush3.xpose.msk.msra.mxu1 %vm891_vm0, %v3799_v25 }
 0x28e   : > { %2912 = vmatprep.subr.mxu1 %v3809_v28 }
 0x290   : > { %2910 = vmatmul.mubr.msk.f32.vlgmr.msra.gmra.mxu1 %vm891_vm0, %v3813_v30 }
 0x291   : > { %2913 = vmatpush3.msra.mxu1 %v3809_v28 }
 0x292   : > { %2914 = vmatprep.subr.mxu1 %v3816_v31 }
 0x293   : > { %2915 = vmatpush3.msra.mxu1 %v3816_v31 }
 0x350   : > { %v2911_v32 = vpop.f32.mrf.mxu1 }
 0x351   : > { %v980_v33 = vmul.f32 0.17677669, %v2911_v32 }
 0x352   : > { %v970_v34 = vpop.f32.mrf.mxu1 }
 0x353   : > { %v979_v35 = vmul.f32 0.17677669, %v970_v34  ;;  %v985_v36 = vsel %vm981_vm1, %v980_v33, -inf }
 0x354   : > { %986 = vmax.xlane.f32.xlu1 %v985_v36 }
 0x355   : > { %v982_v37 = vsel %vm981_vm1, %v979_v35, -inf }
 0x356   : > { %983 = vmax.xlane.f32.xlu0 %v982_v37 }
 0x365   : > { %1113 = vrot.lane.b32.xlu1 %v3799_v25, %s3497_s9 }
 0x369   : > { %1107 = vrot.lane.b32.xlu1 %v3789_v17, %s3497_s9 }
 0x36c   : > { %1115 = vrot.lane.b32.xlu0 %v3797_v24, %s3497_s9 }
 0x36d   : > { %1352 = vrot.lane.b32.xlu1 %v3797_v24, %s3498_s15 }
 0x370   : > { %1109 = vrot.lane.b32.xlu0 %v3813_v30, %s3497_s9 }
 0x371   : > { %1350 = vrot.lane.b32.xlu1 %v3799_v25, %s3498_s15 }
 0x374   : > { %1344 = vrot.lane.b32.xlu0 %v3789_v17, %s3498_s15 }
 0x375   : > { %1346 = vrot.lane.b32.xlu1 %v3813_v30, %s3498_s15 }
 0x378   : > { %1471 = vrot.lane.b32.xlu0 %v3809_v28, %s3498_s15 }
 0x379   : > { %1469 = vrot.lane.b32.xlu1 %v3816_v31, %s3498_s15 }
 0x3dd   : > { %v987_v38 = vpop.xlane.xlu1 %986 }
 0x3de   : > { %v995_v39 = vsub.f32 %v980_v33, %v987_v38  ;;  %v989_v57 = vsub.f32 -inf, %v987_v38 }
 0x3df   : > { %v984_v40 = vpop.xlane.xlu0 %983 }
 0x3e0   : > { %v994_v41 = vsub.f32 %v979_v35, %v984_v40  ;;  %v998_v42 = vmul.f32 1.442695, %v995_v39  ;;  %v988_v58 = vsub.f32 -inf, %v984_v40  ;;  %v992_v59 = vmul.f32 1.442695, %v989_v57 }
 0x3e1   : > { %v1114_v45 = vpop.permute.xlu1 %1113 }
 0x3e2   : > { %v996_v43 = vmul.f32 1.442695, %v994_v41  ;;  %v990_v60 = vmul.f32 1.442695, %v988_v58 }
 0x3e3   : > { %v1116_v44 = vpop.permute.xlu0 %1115 }
 0x3e4   : > { %2919 = vmatprep.subr.msk.mxu1 %vm891_vm0, %v1116_v44  ;;  %3135 = vpow2.f32 %v996_v43 }
 0x3e5   : > { %3137 = vpow2.f32 %v998_v42  ;;  %v1108_v46 = vpop.permute.xlu1 %1107 }
 0x3e6   : > { %3139 = vpow2.f32 %v992_v59 }
 0x3e7   : > { %v1110_v50 = vpop.permute.xlu0 %1109  ;;  %3141 = vpow2.f32 %v990_v60 }
 0x3e9   : > { %v1353_v49 = vpop.permute.xlu1 %1352 }
 0x3eb   : > { %v1345_v52 = vpop.permute.xlu0 %1344 }
 0x3ed   : > { %v1351_v51 = vpop.permute.xlu1 %1350 }
 0x3ef   : > { %v1472_v54 = vpop.permute.xlu0 %1471 }
 0x3f1   : > { %v3846_v47 = vpop.eup %3135  ;;  %v1347_v53 = vpop.permute.xlu1 %1346 }
 0x3f2   : > { %v3848_v48 = vpop.eup %3137  ;;  %2916 = vmatprep.mubr.msk.f32.mxu1 %vm981_vm1, %v3846_v47 }
 0x3f3   : > { %2917 = vmatmul.mubr.msk.f32.vlgmr.msra.gmra.mxu1 %vm981_vm1, %v3848_v48  ;;  %v3140_v61 = vpop.eup %3139 }
 0x3f4   : > { %2920 = vmatpush3.xpose.msk.msra.mxu1 %vm891_vm0, %v1116_v44  ;;  %2923 = vmatprep.mubr.msk.f32.mxu1 %vm891_vm0, %v1108_v46  ;;  %v3142_v62 = vpop.eup %3141  ;;  %v3865_v63 = vmul.f32 0.0, %v3140_v61 }
 0x3f5   : > { %2921 = vmatprep.subr.msk.mxu1 %vm891_vm0, %v1114_v45  ;;  %v1470_v55 = vpop.permute.xlu1 %1469  ;;  %v3870_v2 = vmul.f32 0.0, %v3142_v62 }
 0x3f8   : > { %2922 = vmatpush3.xpose.msk.msra.mxu1 %vm891_vm0, %v1114_v45 }
 0x3f9   : > { %2933 = vmatprep.subr.msk.mxu1 %vm891_vm0, %v1353_v49 }
 0x3fb   : > { %2924 = vmatmul.mubr.msk.f32.vlgmr.msra.gmra.mxu1 %vm891_vm0, %v1110_v50 }
 0x3fc   : > { %2934 = vmatpush3.xpose.msk.msra.mxu1 %vm891_vm0, %v1353_v49  ;;  %2937 = vmatprep.mubr.msk.f32.mxu1 %vm891_vm0, %v1345_v52 }
 0x3fd   : > { %2935 = vmatprep.subr.msk.mxu1 %vm891_vm0, %v1351_v51 }
 0x400   : > { %2936 = vmatpush3.xpose.msk.msra.mxu1 %vm891_vm0, %v1351_v51 }
 0x401   : > { %2940 = vmatprep.subr.mxu1 %v1472_v54 }
 0x403   : > { %2938 = vmatmul.mubr.msk.f32.vlgmr.msra.gmra.mxu1 %vm891_vm0, %v1347_v53 }
 0x404   : > { %2941 = vmatpush3.msra.mxu1 %v1472_v54 }
 0x405   : > { %2942 = vmatprep.subr.mxu1 %v1470_v55 }
 0x406   : > { %2943 = vmatpush3.msra.mxu1 %v1470_v55 }
 0x4b3   : > { %v2918_v0 = vpop.f32.mrf.mxu1 }
 0x4b4   : > { %v3868_v1 = vadd.f32 %v2918_v0, %v3865_v63 }
 0x4b5   : > { %v1082_v3 = vpop.f32.mrf.mxu1 }
 0x4b6   : > { %v3873_v4 = vadd.f32 %v1082_v3, %v3870_v2 }
 0x4bb   : > { %v2925_v5 = vpop.f32.mrf.mxu1 }
 0x4bc   : > { %v1201_v15 = vmul.f32 0.17677669, %v2925_v5 }
 0x4bd   : > { %v1191_v6 = vpop.f32.mrf.mxu1 }
 0x4be   : > { %v1200_v16 = vmul.f32 0.17677669, %v1191_v6  ;;  %v1205_v19 = vsel %vm981_vm1, %v1201_v15, -inf }
 0x4c0   : > { %v1202_v20 = vsel %vm981_vm1, %v1200_v16, -inf }
 0x4c3   : > { %v2939_v7 = vpop.f32.mrf.mxu1 }
 0x4c4   : > { %v1438_v8 = vmul.f32 0.17677669, %v2939_v7 }
 0x4c5   : > { %v1428_v9 = vpop.f32.mrf.mxu1 }
 0x4c6   : > { %v1437_v10 = vmul.f32 0.17677669, %v1428_v9  ;;  %v1442_v11 = vsel %vm981_vm1, %v1438_v8, -inf }
 0x4c7   : > { %1443 = vmax.xlane.f32.xlu1 %v1442_v11 }
 0x4c8   : > { %v1439_v14 = vsel %vm981_vm1, %v1437_v10, -inf }
 0x4c9   : > { %1440 = vmax.xlane.f32.xlu0 %v1439_v14 }
 0x4d8   : > { %1587 = vrot.lane.b32.xlu1 %v3799_v25, %s3499_s16 }
 0x4dc   : > { %1583 = vrot.lane.b32.xlu1 %v3813_v30, %s3499_s16 }
 0x4df   : > { %1589 = vrot.lane.b32.xlu0 %v3797_v24, %s3499_s16 }
 0x4e3   : > { %1581 = vrot.lane.b32.xlu0 %v3789_v17, %s3499_s16 }
 0x500   : > { %1206 = vmax.xlane.f32.xlu1 %v1205_v19 }
 0x502   : > { %1203 = vmax.xlane.f32.xlu0 %v1202_v20 }
 0x511   : > { %1232 = vrot.lane.b32.xlu1 %v3816_v31, %s3497_s9 }
 0x515   : > { %1708 = vrot.lane.b32.xlu1 %v3809_v28, %s3499_s16 }
 0x519   : > { %1706 = vrot.lane.b32.xlu1 %v3816_v31, %s3499_s16 }
 0x550   : > { %v1444_v21 = vpop.xlane.xlu1 %1443 }
 0x551   : > { %v1452_v23 = vsub.f32 %v1438_v8, %v1444_v21  ;;  %v1446_v43 = vsub.f32 -inf, %v1444_v21 }
 0x552   : > { %v1441_v17 = vpop.xlane.xlu0 %1440 }
 0x553   : > { %v1451_v24 = vsub.f32 %v1437_v10, %v1441_v17  ;;  %v1455_v25 = vmul.f32 1.442695, %v1452_v23  ;;  %v1445_v44 = vsub.f32 -inf, %v1441_v17  ;;  %v1449_v45 = vmul.f32 1.442695, %v1446_v43 }
 0x554   : > { %v1588_v33 = vpop.permute.xlu1 %1587  ;;  %v1005_v17 = vsel %vm981_vm1, %v3848_v48, 0.0 }
 0x555   : > { %v1453_v26 = vmul.f32 1.442695, %v1451_v24  ;;  %v1447_v46 = vmul.f32 1.442695, %v1445_v44 }
 0x556   : > { %v1590_v27 = vpop.permute.xlu0 %1589 }
 0x557   : > { %2947 = vmatprep.subr.msk.mxu1 %vm891_vm0, %v1590_v27  ;;  %3143 = vpow2.f32 %v1453_v26 }
 0x558   : > { %3145 = vpow2.f32 %v1455_v25  ;;  %v1584_v31 = vpop.permute.xlu1 %1583  ;;  %v1002_v25 = vsel %vm981_vm1, %v3846_v47, 0.0  ;;  %v1824_v47 = vld [vmem:[#allocation15 + $0x60] sm:$0xff] }
 0x55a   : > { %v1582_v32 = vpop.permute.xlu0 %1581 }
 0x564   : > { %v3144_v29 = vpop.eup %3143 }
 0x565   : > { %v3146_v30 = vpop.eup %3145  ;;  %2944 = vmatprep.mubr.msk.f32.mxu1 %vm981_vm1, %v3144_v29  ;;  %v1459_v5 = vsel %vm981_vm1, %v3144_v29, 0.0 }
 0x566   : > { %2945 = vmatmul.mubr.msk.f32.vlgmr.msra.gmra.mxu1 %vm981_vm1, %v3146_v30  ;;  %v1462_v6 = vsel %vm981_vm1, %v3146_v30, 0.0 }
 0x567   : > { %2948 = vmatpush3.xpose.msk.msra.mxu1 %vm891_vm0, %v1590_v27  ;;  %2951 = vmatprep.mubr.msk.f32.mxu1 %vm891_vm0, %v1582_v32 }
 0x568   : > { %2949 = vmatprep.subr.msk.mxu1 %vm891_vm0, %v1588_v33 }
 0x56b   : > { %2950 = vmatpush3.xpose.msk.msra.mxu1 %vm891_vm0, %v1588_v33 }
 0x56e   : > { %2952 = vmatmul.mubr.msk.f32.vlgmr.msra.gmra.mxu1 %vm891_vm0, %v1584_v31 }
 0x56f   : > { %2116 = vmatprep.mubr.f32.mxu1 %v3496_v56 }
 0x589   : > { %v3902_v34 = vpop.xlane.xlu1 %1206 }
 0x58a   : > { %v1215_v35 = vsub.f32 %v1201_v15, %v3902_v34 }
 0x58b   : > { %v3905_v36 = vpop.xlane.xlu0 %1203 }
 0x58c   : > { %v1218_v37 = vmul.f32 1.442695, %v1215_v35  ;;  %v1214_v38 = vsub.f32 %v1200_v16, %v3905_v36 }
 0x58d   : > { %v1233_v9 = vpop.permute.xlu1 %1232 }
 0x58e   : > { %v1216_v39 = vmul.f32 1.442695, %v1214_v38  ;;  %3147 = vpow2.f32 %v1218_v37  ;;  %v1827_v37 = vld [vmem:[#allocation15 + $0x78] sm:$0xff]  ;;  %v1826_v38 = vld [vmem:[#allocation15 + $0x70] sm:$0xff] }
 0x590   : > { %3149 = vpow2.f32 %v1216_v39  ;;  %v1825_v39 = vld [vmem:[#allocation15 + $0x68] sm:$0xff] }
 0x591   : > { %3151 = vpow2.f32 %v1449_v45  ;;  %v1709_v15 = vpop.permute.xlu1 %1708 }
 0x592   : > { %3153 = vpow2.f32 %v1447_v46  ;;  %v1209_v46 = vsub.f32 -inf, %v3902_v34 }
 0x595   : > { %v1707_v19 = vpop.permute.xlu1 %1706 }
 0x59b   : > { %v3148_v40 = vpop.eup %3147 }
 0x59c   : > { %v1225_v41 = vsel %vm981_vm1, %v3148_v40, 0.0 }
 0x59d   : > { %v3150_v42 = vpop.eup %3149  ;;  %1226 = vadd.xlane.f32.xlu1 %v1225_v41 }
 0x59e   : > { %2930 = vmatprep.mubr.msk.f32.mxu0 %vm981_vm1, %v3150_v42  ;;  %v3152_v49 = vpop.eup %3151  ;;  %v1222_v3 = vsel %vm981_vm1, %v3150_v42, 0.0 }
 0x59f   : > { %v3154_v50 = vpop.eup %3153  ;;  %v1458_v51 = vmul.f32 0.0, %v3152_v49  ;;  %v1208_v49 = vsub.f32 -inf, %v3905_v36 }
 0x5a0   : > { %v1457_v54 = vmul.f32 0.0, %v3154_v50 }
 0x626   : > { %v2946_v52 = vpop.f32.mrf.mxu1  ;;  %v1227_v41 = vpop.xlane.xlu1 %1226 }
 0x627   : > { %v1557_v53 = vadd.f32 %v2946_v52, %v1458_v51  ;;  %v1212_v52 = vmul.f32 1.442695, %v1209_v46 }
 0x628   : > { %v1547_v55 = vpop.f32.mrf.mxu1 }
 0x629   : > { %v1556_v57 = vadd.f32 %v1547_v55, %v1457_v54 }
 0x62e   : > { %v2953_v58 = vpop.f32.mrf.mxu1 }
 0x62f   : > { %v1675_v59 = vmul.f32 0.17677669, %v2953_v58 }
 0x630   : > { %v1665_v60 = vpop.f32.mrf.mxu1 }
 0x631   : > { %v1674_v61 = vmul.f32 0.17677669, %v1665_v60  ;;  %v1679_v62 = vsel %vm981_vm1, %v1675_v59, -inf }
 0x632   : > { %1680 = vmax.xlane.f32.xlu0 %v1679_v62 }
 0x633   : > { %v1676_v0 = vsel %vm981_vm1, %v1674_v61, -inf }
 0x636   : > { %1677 = vmax.xlane.f32.xlu0 %v1676_v0 }
 0x64c   : > { %1234 = vrot.lane.b32.xlu0 %v3809_v28, %s3497_s9 }
 0x66b   : > { %1223 = vadd.xlane.f32.xlu0 %v1222_v3 }
 0x66f   : > { %1460 = vadd.xlane.f32.xlu0 %v1459_v5 }
 0x673   : > { %1463 = vadd.xlane.f32.xlu0 %v1462_v6  ;;  %v1821_v6 = vld [vmem:[#allocation15 + $0x48] sm:$0xff] }
 0x6bb   : > { %v3917_v7 = vpop.xlane.xlu0 %1680 }
 0x6bc   : > { %v1689_v8 = vsub.f32 %v1675_v59, %v3917_v7 }
 0x6be   : > { %v1692_v10 = vmul.f32 1.442695, %v1689_v8  ;;  %v1820_v8 = vld [vmem:[#allocation15 + $0x40] sm:$0xff] }
 0x6bf   : > { %v3920_v11 = vpop.xlane.xlu0 %1677 }
 0x6c0   : > { %v1688_v14 = vsub.f32 %v1674_v61, %v3920_v11  ;;  %3155 = vpow2.f32 %v1692_v10 }
 0x6c2   : > { %v1690_v28 = vmul.f32 1.442695, %v1688_v14 }
 0x6c3   : > { %v1235_v16 = vpop.permute.xlu0 %1234 }
 0x6c4   : > { %2926 = vmatprep.subr.mxu0 %v1235_v16  ;;  %3157 = vpow2.f32 %v1690_v28 }
 0x6c5   : > { %2927 = vmatpush3.msra.mxu0 %v1235_v16  ;;  %v1817_v16 = vld [vmem:[#allocation15 + $0x28] sm:$0xff] }
 0x6c6   : > { %2928 = vmatprep.subr.mxu0 %v1233_v9 }
 0x6c7   : > { %2929 = vmatpush3.msra.mxu0 %v1233_v9  ;;  %v1819_v9 = vld [vmem:[#allocation15 + $0x38] sm:$0xff] }
 0x6c8   : > { %2931 = vmatmul.mubr.msk.f32.vlgmr.msra.gmra.mxu0 %vm981_vm1, %v3148_v40  ;;  %2954 = vmatprep.subr.mxu0 %v1709_v15  ;;  %v1823_v40 = vld [vmem:[#allocation15 + $0x58] sm:$0xff] }
 0x6c9   : > { %2955 = vmatpush3.msra.mxu0 %v1709_v15  ;;  %v1818_v15 = vld [vmem:[#allocation15 + $0x30] sm:$0xff] }
 0x6ca   : > { %2956 = vmatprep.subr.mxu0 %v1707_v19 }
 0x6cb   : > { %2957 = vmatpush3.msra.mxu0 %v1707_v19 }
 0x6cc   : > { %2961 = vmatprep.subr.mxu0 %v1827_v37 }
 0x6cd   : > { %v3156_v20 = vpop.eup %3155 }
 0x6ce   : > { %v1699_v21 = vsel %vm981_vm1, %v3156_v20, 0.0 }
 0x6cf   : > { %1700 = vadd.xlane.f32.xlu1 %v1699_v21 }
 0x6d1   : > { %v3158_v23 = vpop.eup %3157 }
 0x6d2   : > { %2958 = vmatprep.mubr.msk.f32.mxu0 %vm981_vm1, %v3158_v23  ;;  %v1696_v24 = vsel %vm981_vm1, %v3158_v23, 0.0 }
 0x6d3   : > { %1006 = vadd.xlane.f32.xlu1 %v1005_v17  ;;  %1697 = vadd.xlane.f32.xlu0 %v1696_v24 }
 0x6d4   : > { %2959 = vmatmul.mubr.msk.f32.vlgmr.msra.gmra.mxu0 %vm981_vm1, %v3156_v20 }
 0x6d5   : > { %2962 = vmatpush3.msra.mxu0 %v1827_v37 }
 0x6d6   : > { %2963 = vmatprep.subr.mxu0 %v1826_v38 }
 0x6d7   : > { %1003 = vadd.xlane.f32.xlu0 %v1002_v25  ;;  %2964 = vmatpush3.msra.mxu0 %v1826_v38 }
 0x6d8   : > { %2965 = vmatprep.subr.mxu0 %v1825_v39 }
 0x6d9   : > { %2966 = vmatpush3.msra.mxu0 %v1825_v39 }
 0x6da   : > { %2967 = vmatprep.subr.mxu0 %v1824_v47 }
 0x6db   : > { %2968 = vmatpush3.msra.mxu0 %v1824_v47 }
 0x6dc   : > { %2969 = vmatprep.subr.mxu0 %v1823_v40 }
 0x6dd   : > { %2970 = vmatpush3.msra.mxu0 %v1823_v40 }
 0x6f4   : > { %v1224_v26 = vpop.xlane.xlu0 %1223 }
 0x6f8   : > { %v1461_v27 = vpop.xlane.xlu0 %1460 }
 0x6f9   : > { %v1465_v29 = vadd.f32 %v1461_v27, %v1457_v54  ;;  %v1683_v54 = vsub.f32 -inf, %v3917_v7  ;;  %v1815_v27 = vld [vmem:[#allocation15 + $0x18] sm:$0xff] }
 0x6fb   : > { %3159 = vrcp.f32 %v1465_v29  ;;  %v1686_v58 = vmul.f32 1.442695, %v1683_v54  ;;  %v1814_v29 = vld [vmem:[#allocation15 + $0x10] sm:$0xff] }
 0x6fc   : > { %v1464_v30 = vpop.xlane.xlu0 %1463 }
 0x6fd   : > { %v1466_v32 = vadd.f32 %v1464_v30, %v1458_v51  ;;  %v1813_v30 = vld [vmem:[#allocation15 + $0x8] sm:$0xff] }
 0x6ff   : > { %3161 = vrcp.f32 %v1466_v32  ;;  %v1812_v32 = vld [vmem:[#allocation15] sm:$0xff] }
 0x708   : > { %v3160_v33 = vpop.eup %3159 }
 0x709   : > { %v3932_v31 = vmul.f32 %v3160_v33, %v1556_v57  ;;  %v1682_v57 = vsub.f32 -inf, %v3920_v11 }
 0x70b   : > { %v1684_v36 = vmul.f32 1.442695, %v1682_v57  ;;  %v3204_v57 = vld [vmem:[%s3749_s19] sm:$0xff] }
 0x70c   : > { %v3162_v48 = vpop.eup %3161 }
 0x70d   : > { %v3934_v35 = vmul.f32 %v3162_v48, %v1557_v53  ;;  %v1210_v53 = vmul.f32 1.442695, %v1208_v49 }
 0x758   : > { %v1701_v42 = vpop.xlane.xlu1 %1700 }
 0x75c   : > { %v1007_v43 = vpop.xlane.xlu1 %1006  ;;  %v1698_v44 = vpop.xlane.xlu0 %1697 }
 0x75d   : > { %v1009_v45 = vadd.f32 %v1007_v43, %v3865_v63 }
 0x75f   : > { %3163 = vrcp.f32 %v1009_v45 }
 0x760   : > { %v1004_v50 = vpop.xlane.xlu0 %1003 }
 0x761   : > { %v1008_v51 = vadd.f32 %v1004_v50, %v3870_v2 }
 0x763   : > { %3165 = vrcp.f32 %v1008_v51  ;;  %v2715_v51 = vld [vmem:[%s4063_s6] ss:$0 sm:$0xff] }
 0x764   : > { %3167 = vpow2.f32 %v1212_v52  ;;  %v3203_v52 = vld [vmem:[%s3749_s19 + $0x8] sm:$0xff] }
 0x765   : > { %3169 = vpow2.f32 %v1210_v53 }
 0x766   : > { %3171 = vpow2.f32 %v1686_v58 }
 0x767   : > { %3173 = vpow2.f32 %v1684_v36  ;;  %v2029_v36 = vld [vmem:[#allocation16 + $0x1f8] sm:$0xff] }
 0x76c   : > { %v3164_v55 = vpop.eup %3163 }
 0x76d   : > { %v1096_v63 = vmul.f32 %v3164_v55, %v3868_v1  ;;  %v1822_v1 = vld [vmem:[#allocation15 + $0x50] sm:$0xff] }
 0x76e   : > { %2971 = vmatprep.subr.mxu0 %v1822_v1 }
 0x76f   : > { %1098 = vst.msk [vmem:[#allocation3 + $0x8] sm:$0xff] %vm891_vm0, %v1096_v63  ;;  %2972 = vmatpush3.msra.mxu0 %v1822_v1  ;;  %v2021_v1 = vld [vmem:[#allocation16 + $0x1b8] sm:$0xff] }
 0x770   : > { %v3166_v34 = vpop.eup %3165  ;;  %2973 = vmatprep.subr.mxu0 %v1821_v6 }
 0x771   : > { %v1094_v59 = vmul.f32 %v3166_v34, %v3873_v4  ;;  %v3168_v2 = vpop.eup %3167  ;;  %2974 = vmatpush3.msra.mxu0 %v1821_v6  ;;  %v2027_v34 = vld [vmem:[#allocation16 + $0x1e8] sm:$0xff]  ;;  %v2020_v6 = vld [vmem:[#allocation16 + $0x1b0] sm:$0xff] }
 0x772   : > { %v3170_v60 = vpop.eup %3169  ;;  %v1221_v61 = vmul.f32 0.0, %v3168_v2  ;;  %2975 = vmatprep.subr.mxu0 %v1820_v8  ;;  %2052 = vmatprep.subr.mxu1 %v2027_v34  ;;  %v2028_v2 = vld [vmem:[#allocation16 + $0x1f0] sm:$0xff]  ;;  %v1981_v34 = vld [vmem:[#allocation16 + $0x78] sm:$0xff] }
 0x773   : > { %1097 = vst.msk [vmem:[#allocation3] sm:$0xff] %vm891_vm0, %v1094_v59  ;;  %v1220_v0 = vmul.f32 0.0, %v3170_v60  ;;  %v3172_v5 = vpop.eup %3171  ;;  %2976 = vmatpush3.msra.mxu0 %v1820_v8  ;;  %v2026_v59 = vld [vmem:[#allocation16 + $0x1e0] sm:$0xff]  ;;  %v2023_v60 = vld [vmem:[#allocation16 + $0x1c8] sm:$0xff] }
 0x774   : > { %v1229_v62 = vadd.f32 %v1227_v41, %v1221_v61  ;;  %v3174_v7 = vpop.eup %3173  ;;  %v1695_v4 = vmul.f32 0.0, %v3172_v5  ;;  %2977 = vmatprep.subr.mxu0 %v1819_v9  ;;  %2053 = vmatpush1.msra.mxu1 %v2026_v59  ;;  %v2018_v5 = vld [vmem:[#allocation16 + $0x1a0] sm:$0xff]  ;;  %v1980_v59 = vld [vmem:[#allocation16 + $0x70] sm:$0xff] }
 0x775   : > { %v1228_v3 = vadd.f32 %v1224_v26, %v1220_v0  ;;  %v1694_v11 = vmul.f32 0.0, %v3174_v7  ;;  %2978 = vmatpush3.msra.mxu0 %v1819_v9  ;;  %v1816_v26 = vld [vmem:[#allocation15 + $0x20] sm:$0xff]  ;;  %2054 = vmatprep.subr.mxu1 %v2023_v60  ;;  %v2015_v7 = vld [vmem:[#allocation16 + $0x188] sm:$0xff]  ;;  %v2016_v9 = vld [vmem:[#allocation16 + $0x190] sm:$0xff] }
 0x776   : > { %3175 = vrcp.f32 %v1229_v62  ;;  %v1703_v10 = vadd.f32 %v1701_v42, %v1695_v4  ;;  %2979 = vmatprep.subr.mxu0 %v1818_v15  ;;  %v2022_v62 = vld [vmem:[#allocation16 + $0x1c0] sm:$0xff]  ;;  %v1977_v60 = vld [vmem:[#allocation16 + $0x58] sm:$0xff] }
 0x777   : > { %3177 = vrcp.f32 %v1228_v3  ;;  %v1702_v14 = vadd.f32 %v1698_v44, %v1694_v11  ;;  %2980 = vmatpush3.msra.mxu0 %v1818_v15  ;;  %v2019_v3 = vld [vmem:[#allocation16 + $0x1a8] sm:$0xff]  ;;  %2055 = vmatpush1.msra.mxu1 %v2022_v62  ;;  %v2014_v8 = vld [vmem:[#allocation16 + $0x180] sm:$0xff]  ;;  %v1976_v62 = vld [vmem:[#allocation16 + $0x50] sm:$0xff] }
 0x778   : > { %3179 = vrcp.f32 %v1703_v10  ;;  %2981 = vmatprep.subr.mxu0 %v1817_v16  ;;  %2056 = vmatprep.subr.mxu1 %v2019_v3  ;;  %v1973_v3 = vld [vmem:[#allocation16 + $0x38] sm:$0xff] }
 0x779   : > { %3181 = vrcp.f32 %v1702_v14  ;;  %2982 = vmatpush3.msra.mxu0 %v1817_v16  ;;  %2057 = vmatpush1.msra.mxu1 %v2018_v5  ;;  %v1972_v5 = vld [vmem:[#allocation16 + $0x30] sm:$0xff] }
 0x77a   : > { %2983 = vmatprep.subr.mxu0 %v1816_v26  ;;  %2058 = vmatprep.subr.mxu1 %v2015_v7  ;;  %v1969_v7 = vld [vmem:[#allocation16 + $0x18] sm:$0xff] }
 0x77b   : > { %2984 = vmatpush3.msra.mxu0 %v1816_v26  ;;  %2059 = vmatpush1.msra.mxu1 %v2014_v8  ;;  %v2009_v26 = vld [vmem:[#allocation16 + $0x158] sm:$0xff]  ;;  %v1968_v8 = vld [vmem:[#allocation16 + $0x10] sm:$0xff] }
 0x77c   : > { %2985 = vmatprep.subr.mxu0 %v1815_v27 }
 0x77d   : > { %2986 = vmatpush3.msra.mxu0 %v1815_v27  ;;  %v2006_v27 = vld [vmem:[#allocation16 + $0x140] sm:$0xff] }
 0x77e   : > { %2987 = vmatprep.subr.mxu0 %v1814_v29 }
 0x77f   : > { %2988 = vmatpush3.msra.mxu0 %v1814_v29  ;;  %v2008_v29 = vld [vmem:[#allocation16 + $0x150] sm:$0xff] }
 0x780   : > { %2989 = vmatprep.subr.mxu0 %v1813_v30 }
 0x781   : > { %2990 = vmatpush3.msra.mxu0 %v1813_v30  ;;  %v2003_v30 = vld [vmem:[#allocation16 + $0x128] sm:$0xff] }
 0x782   : > { %2991 = vmatprep.subr.mxu0 %v1812_v32 }
 0x783   : > { %v3176_v20 = vpop.eup %3175  ;;  %2992 = vmatpush3.msra.mxu0 %v1812_v32  ;;  %v2005_v32 = vld [vmem:[#allocation16 + $0x138] sm:$0xff] }
 0x784   : > { %v3178_v24 = vpop.eup %3177  ;;  %2129 = vmatprep.subr.mxu0 %v2029_v36  ;;  %v1978_v36 = vld [vmem:[#allocation16 + $0x60] sm:$0xff] }
 0x785   : > { %v3180_v37 = vpop.eup %3179 }
 0x786   : > { %v3182_v40 = vpop.eup %3181 }
 0x788   : > { %v2932_v28 = vpop.f32.mrf.mxu0 }
 0x789   : > { %v1320_v19 = vadd.f32 %v2932_v28, %v1221_v61  ;;  %v2025_v61 = vld [vmem:[#allocation16 + $0x1d8] sm:$0xff] }
 0x78a   : > { %v1310_v21 = vpop.f32.mrf.mxu0 }
 0x78b   : > { %v1324_v23 = vmul.f32 %v3176_v20, %v1320_v19  ;;  %v1319_v17 = vadd.f32 %v1310_v21, %v1220_v0  ;;  %v2024_v0 = vld [vmem:[#allocation16 + $0x1d0] sm:$0xff]  ;;  %v2011_v21 = vld [vmem:[#allocation16 + $0x168] sm:$0xff] }
 0x78c   : > { %2060 = vmatprep.subr.mxu1 %v2011_v21 }
 0x78d   : > { %v1322_v25 = vmul.f32 %v3178_v24, %v1319_v17  ;;  %1329 = vrot.lane.b32.xlu1 %v1324_v23, %s3499_s16  ;;  %v2013_v23 = vld [vmem:[#allocation16 + $0x178] sm:$0xff]  ;;  %v2010_v17 = vld [vmem:[#allocation16 + $0x160] sm:$0xff]  ;;  %v2012_v24 = vld [vmem:[#allocation16 + $0x170] sm:$0xff] }
 0x78e   : > { %2061 = vmatpush1.msra.mxu1 %v2010_v17  ;;  %v2716_v17 = vld [vmem:[%s4064_s7] ss:$0 sm:$0xff] }
 0x78f   : > { %1327 = vrot.lane.b32.xlu0 %v1322_v25, %s3499_s16  ;;  %v2007_v25 = vld [vmem:[#allocation16 + $0x148] sm:$0xff]  ;;  %s2725_s16 = sshll.u32 %s4110_s24, 8 }
 0x790   : > { %2062 = vmatprep.subr.mxu1 %v2007_v25  ;;  %v2717_v25 = vld [vmem:[%s4065_s8] ss:$0 sm:$0xff]  ;;  %s4007_s21 = scalar_lea.hbm %s4112_s20, %s2725_s16 }
 0x791   : > { %1564 = vrot.lane.b32.xlu1 %v3932_v31, %s3498_s15  ;;  %2063 = vmatpush1.msra.mxu1 %v2006_v27 }
 0x792   : > { %2064 = vmatprep.subr.mxu1 %v2003_v30 }
 0x794   : > { %v2960_v33 = vpop.f32.mrf.mxu0 }
 0x795   : > { %1566 = vrot.lane.b32.xlu1 %v3934_v35, %s3498_s15  ;;  %v1794_v48 = vadd.f32 %v2960_v33, %v1695_v4  ;;  %v2017_v4 = vld [vmem:[#allocation16 + $0x198] sm:$0xff]  ;;  %v2002_v33 = vld [vmem:[#allocation16 + $0x120] sm:$0xff] }
 0x796   : > { %v1784_v38 = vpop.f32.mrf.mxu0  ;;  %2065 = vmatpush1.msra.mxu1 %v2002_v33  ;;  %v2295_v33 = vld [vmem:[#allocation18 + $0x178] sm:$0xff] }
 0x797   : > { %v1798_v39 = vmul.f32 %v3180_v37, %v1794_v48  ;;  %v1793_v47 = vadd.f32 %v1784_v38, %v1694_v11  ;;  %v2004_v48 = vld [vmem:[#allocation16 + $0x130] sm:$0xff]  ;;  %v1999_v37 = vld [vmem:[#allocation16 + $0x108] sm:$0xff]  ;;  %v2001_v38 = vld [vmem:[#allocation16 + $0x118] sm:$0xff] }
 0x798   : > { %2066 = vmatprep.subr.mxu1 %v1999_v37  ;;  %v2278_v37 = vld [vmem:[#allocation18 + $0xf0] sm:$0xff] }
 0x799   : > { %v1796_v31 = vmul.f32 %v3182_v40, %v1793_v47  ;;  %1803 = vrot.lane.b32.xlu1 %v1798_v39, %s3497_s9  ;;  %v1998_v39 = vld [vmem:[#allocation16 + $0x100] sm:$0xff]  ;;  %v2000_v47 = vld [vmem:[#allocation16 + $0x110] sm:$0xff]  ;;  %v1995_v40 = vld [vmem:[#allocation16 + $0xe8] sm:$0xff] }
 0x79a   : > { %2067 = vmatpush1.msra.mxu1 %v1998_v39  ;;  %v2262_v39 = vld [vmem:[#allocation18 + $0x70] sm:$0xff] }
 0x79b   : > { %1801 = vrot.lane.b32.xlu0 %v1796_v31, %s3497_s9  ;;  %v1997_v31 = vld [vmem:[#allocation16 + $0xf8] sm:$0xff]  ;;  %2068 = vmatprep.subr.mxu1 %v1995_v40  ;;  %v2277_v40 = vld [vmem:[#allocation18 + $0xe8] sm:$0xff]  ;;  %s592_s9 = scalar_lea.vmem [#allocation19], %s2681_s11 }
 0x79c   : > { %s2502_s15 = sshll.u32 %s592_s9, 4  ;;  %s4009_s15 = int_to_ptr.vmem [resolvable:$true] %s2502_s15 }
 0x79d   : > { %s3389_s11 = scalar_lea.vmem %s4009_s15, 256  ;;  %p3396_p9 = scmp.lt.s32.totalorder %s4009_s15, %s3394_s3 }
 0x79e   : > { %p3390_p3 = scmp.ne.s32.totalorder %s4009_s15, %s3389_s11  ;;  %p3397_p8 = scmp.lt.s32.totalorder %s3395_s13, %s3389_s11 }
 0x7a0   : > { %p3391_p5 = pnand %p3390_p3, %p3710_p1  ;;  %p3398_p10 = por %p3397_p8, %p3396_p9 }
 0x7a2   : > { %p3392_p7 = pneg %p3391_p5 }
 0x7a4   : > { %p3399_p6 = pnand %p3398_p10, %p3392_p7 }
 0x7ff   : > { %v1330_v41 = vpop.permute.xlu1 %1329 }
 0x800   : > { %1335 = vst.msk [vmem:[#allocation3 + $0x8] sm:$0xff] %vm1333_vm2, %v1330_v41  ;;  %v1994_v41 = vld [vmem:[#allocation16 + $0xe0] sm:$0xff] }
 0x801   : > { %v1328_v42 = vpop.permute.xlu0 %1327  ;;  %2069 = vmatpush1.msra.mxu1 %v1994_v41  ;;  %v2293_v41 = vld [vmem:[#allocation18 + $0x168] sm:$0xff] }
 0x802   : > { %1334 = vst.msk [vmem:[#allocation3] sm:$0xff] %vm1333_vm2, %v1328_v42  ;;  %v1996_v42 = vld [vmem:[#allocation16 + $0xf0] sm:$0xff] }
 0x803   : > { %v1565_v35 = vpop.permute.xlu1 %1564 }
 0x804   : > { %1571 = vst.msk [vmem:[#allocation3] sm:$0xff] %vm1570_vm3, %v1565_v35  ;;  %v1991_v35 = vld [vmem:[#allocation16 + $0xc8] sm:$0xff] }
 0x805   : > { %2070 = vmatprep.subr.mxu1 %v1991_v35  ;;  %v2260_v35 = vld [vmem:[#allocation18 + $0x60] sm:$0xff] }
 0x807   : > { %v1567_v43 = vpop.permute.xlu1 %1566 }
 0x808   : > { %1572 = vst.msk [vmem:[#allocation3 + $0x8] sm:$0xff] %vm1570_vm3, %v1567_v43  ;;  %v1993_v43 = vld [vmem:[#allocation16 + $0xd8] sm:$0xff] }
 0x80b   : > { %v1804_v44 = vpop.permute.xlu1 %1803 }
 0x80c   : > { %1809 = vst.msk [vmem:[#allocation3 + $0x8] sm:$0xff] %vm1807_vm4, %v1804_v44  ;;  %v1990_v44 = vld [vmem:[#allocation16 + $0xc0] sm:$0xff] }
 0x80d   : > { %v1802_v45 = vpop.permute.xlu0 %1801  ;;  %2071 = vmatpush1.msra.mxu1 %v1990_v44  ;;  %v2275_v44 = vld [vmem:[#allocation18 + $0xd8] sm:$0xff] }
 0x80e   : > { %1808 = vst.msk [vmem:[#allocation3] sm:$0xff] %vm1807_vm4, %v1802_v45  ;;  %v1992_v45 = vld [vmem:[#allocation16 + $0xd0] sm:$0xff] }
 0x813   : > { %v1811_v49 = vld [vmem:[#allocation3 + $0x8] sm:$0xff] }
 0x815   : > { %v1810_v46 = vld [vmem:[#allocation3] sm:$0xff] }
 0x816   : > { %2993 = vmatprep.mubr.f32.mxu0 %v1810_v46  ;;  %v1987_v46 = vld [vmem:[#allocation16 + $0xa8] sm:$0xff] }
 0x817   : > { %2994 = vmatmul.mubr.f32.vlgmr.msra.gmra.mxu0 %v1811_v49  ;;  %v1989_v49 = vld [vmem:[#allocation16 + $0xb8] sm:$0xff]  ;;  %2072 = vmatprep.subr.mxu1 %v1987_v46 }
 0x818   : > { %2193 = vmatprep.mubr.f32.mxu0 %v3496_v56  ;;  %2130 = vmatpush1.msra.mxu0 %v2028_v2  ;;  %v1975_v2 = vld [vmem:[#allocation16 + $0x48] sm:$0xff]  ;;  %v2259_v46 = vld [vmem:[#allocation18 + $0x58] sm:$0xff] }
 0x819   : > { %2131 = vmatprep.subr.mxu0 %v2025_v61  ;;  %v1974_v61 = vld [vmem:[#allocation16 + $0x40] sm:$0xff] }
 0x81a   : > { %2132 = vmatpush1.msra.mxu0 %v2024_v0  ;;  %v1971_v0 = vld [vmem:[#allocation16 + $0x28] sm:$0xff] }
 0x81b   : > { %2133 = vmatprep.subr.mxu0 %v2021_v1  ;;  %v1970_v1 = vld [vmem:[#allocation16 + $0x20] sm:$0xff] }
 0x81c   : > { %2134 = vmatpush1.msra.mxu0 %v2020_v6  ;;  %v1967_v6 = vld [vmem:[#allocation16 + $0x8] sm:$0xff] }
 0x81d   : > { %2135 = vmatprep.subr.mxu0 %v2017_v4  ;;  %v1966_v4 = vld [vmem:[#allocation16] sm:$0xff] }
 0x81e   : > { %2136 = vmatpush1.msra.mxu0 %v2016_v9  ;;  %v2279_v9 = vld [vmem:[#allocation18 + $0xf8] sm:$0xff] }
 0x81f   : > { %2137 = vmatprep.subr.mxu0 %v2013_v23 }
 0x820   : > { %2138 = vmatpush1.msra.mxu0 %v2012_v24 }
 0x821   : > { %2139 = vmatprep.subr.mxu0 %v2009_v26 }
 0x822   : > { %2140 = vmatpush1.msra.mxu0 %v2008_v29 }
 0x823   : > { %2141 = vmatprep.subr.mxu0 %v2005_v32  ;;  %v2263_v32 = vld [vmem:[#allocation18 + $0x78] sm:$0xff] }
 0x824   : > { %2142 = vmatpush1.msra.mxu0 %v2004_v48 }
 0x825   : > { %2143 = vmatprep.subr.mxu0 %v2001_v38  ;;  %v2310_v38 = vld [vmem:[#allocation18 + $0x1f0] sm:$0xff] }
 0x826   : > { %2144 = vmatpush1.msra.mxu0 %v2000_v47  ;;  %v2294_v47 = vld [vmem:[#allocation18 + $0x170] sm:$0xff] }
 0x827   : > { %2145 = vmatprep.subr.mxu0 %v1997_v31  ;;  %v2261_v31 = vld [vmem:[#allocation18 + $0x68] sm:$0xff] }
 0x828   : > { %2146 = vmatpush1.msra.mxu0 %v1996_v42  ;;  %v2308_v42 = vld [vmem:[#allocation18 + $0x1e0] sm:$0xff] }
 0x829   : > { %2147 = vmatprep.subr.mxu0 %v1993_v43  ;;  %v2292_v43 = vld [vmem:[#allocation18 + $0x160] sm:$0xff] }
 0x82a   : > { %2148 = vmatpush1.msra.mxu0 %v1992_v45  ;;  %v2307_v45 = vld [vmem:[#allocation18 + $0x1d8] sm:$0xff] }
 0x82b   : > { %2149 = vmatprep.subr.mxu0 %v1989_v49  ;;  %v2291_v49 = vld [vmem:[#allocation18 + $0x158] sm:$0xff] }
 0x8d7   : > { %v2995_v50 = vpop.f32.mrf.mxu0 }
 0x8d8   : > { %v1907_v53 = vadd.f32 %v3203_v52, %v2995_v50  ;;  %v1986_v50 = vld [vmem:[#allocation16 + $0xa0] sm:$0xff]  ;;  %v1983_v52 = vld [vmem:[#allocation16 + $0x88] sm:$0xff] }
 0x8d9   : > { %v1894_v54 = vpop.f32.mrf.mxu0  ;;  %2073 = vmatpush1.msra.mxu1 %v1986_v50  ;;  %v2274_v50 = vld [vmem:[#allocation18 + $0xd0] sm:$0xff] }
 0x8da   : > { %v3959_v55 = vadd.f32 %v2715_v51, %v1907_v53  ;;  %v1906_v63 = vadd.f32 %v3204_v57, %v1894_v54  ;;  %v1985_v53 = vld [vmem:[#allocation16 + $0x98] sm:$0xff]  ;;  %v1982_v54 = vld [vmem:[#allocation16 + $0x80] sm:$0xff]  ;;  %v1984_v57 = vld [vmem:[#allocation16 + $0x90] sm:$0xff]  ;;  %2074 = vmatprep.subr.mxu1 %v1983_v52 }
 0x8db   : > { %2075 = vmatpush1.msra.mxu1 %v1982_v54  ;;  %v2258_v52 = vld [vmem:[#allocation18 + $0x50] sm:$0xff]  ;;  %v2273_v54 = vld [vmem:[#allocation18 + $0xc8] sm:$0xff] }
 0x8dc   : > { %v3962_v58 = vadd.f32 %v2715_v51, %v1906_v63  ;;  %1923 = vadd.xlane.f32.xlu1 %v3959_v55  ;;  %v1988_v51 = vld [vmem:[#allocation16 + $0xb0] sm:$0xff]  ;;  %v1979_v63 = vld [vmem:[#allocation16 + $0x68] sm:$0xff] }
 0x8dd   : > { %2150 = vmatpush1.msra.mxu0 %v1988_v51  ;;  %2076 = vmatprep.subr.mxu1 %v1979_v63  ;;  %v2306_v51 = vld [vmem:[#allocation18 + $0x1d0] sm:$0xff]  ;;  %v2257_v63 = vld [vmem:[#allocation18 + $0x48] sm:$0xff] }
 0x8de   : > { %1921 = vadd.xlane.f32.xlu0 %v3962_v58  ;;  %2151 = vmatprep.subr.mxu0 %v1985_v53  ;;  %v2290_v53 = vld [vmem:[#allocation18 + $0x150] sm:$0xff] }
 0x8df   : > { %2152 = vmatpush1.msra.mxu0 %v1984_v57  ;;  %2077 = vmatpush1.msra.mxu1 %v1978_v36  ;;  %v2305_v57 = vld [vmem:[#allocation18 + $0x1c8] sm:$0xff]  ;;  %v2272_v36 = vld [vmem:[#allocation18 + $0xc0] sm:$0xff] }
 0x8e0   : > { %2153 = vmatprep.subr.mxu0 %v1981_v34  ;;  %2078 = vmatprep.subr.mxu1 %v1975_v2  ;;  %v2289_v34 = vld [vmem:[#allocation18 + $0x148] sm:$0xff]  ;;  %v2256_v2 = vld [vmem:[#allocation18 + $0x40] sm:$0xff] }
 0x8e1   : > { %2154 = vmatpush1.msra.mxu0 %v1980_v59  ;;  %2079 = vmatpush1.msra.mxu1 %v1974_v61  ;;  %v2304_v59 = vld [vmem:[#allocation18 + $0x1c0] sm:$0xff]  ;;  %v2271_v61 = vld [vmem:[#allocation18 + $0xb8] sm:$0xff] }
 0x8e2   : > { %2155 = vmatprep.subr.mxu0 %v1977_v60  ;;  %2080 = vmatprep.subr.mxu1 %v1971_v0  ;;  %v2288_v60 = vld [vmem:[#allocation18 + $0x140] sm:$0xff]  ;;  %v2255_v0 = vld [vmem:[#allocation18 + $0x38] sm:$0xff] }
 0x8e3   : > { %2156 = vmatpush1.msra.mxu0 %v1976_v62  ;;  %2081 = vmatpush1.msra.mxu1 %v1970_v1  ;;  %v2303_v62 = vld [vmem:[#allocation18 + $0x1b8] sm:$0xff]  ;;  %v2270_v1 = vld [vmem:[#allocation18 + $0xb0] sm:$0xff] }
 0x8e4   : > { %2157 = vmatprep.subr.mxu0 %v1973_v3  ;;  %2082 = vmatprep.subr.mxu1 %v1967_v6  ;;  %v2287_v3 = vld [vmem:[#allocation18 + $0x138] sm:$0xff]  ;;  %v2254_v6 = vld [vmem:[#allocation18 + $0x30] sm:$0xff] }
 0x8e5   : > { %2158 = vmatpush1.msra.mxu0 %v1972_v5  ;;  %2083 = vmatpush1.msra.mxu1 %v1966_v4  ;;  %v2302_v5 = vld [vmem:[#allocation18 + $0x1b0] sm:$0xff]  ;;  %v2269_v4 = vld [vmem:[#allocation18 + $0xa8] sm:$0xff] }
 0x8e6   : > { %2159 = vmatprep.subr.mxu0 %v1969_v7  ;;  %2794 = vmatprep.subr.mxu1 %v2279_v9  ;;  %v2286_v7 = vld [vmem:[#allocation18 + $0x130] sm:$0xff]  ;;  %v2253_v9 = vld [vmem:[#allocation18 + $0x28] sm:$0xff] }
 0x8e7   : > { %2160 = vmatpush1.msra.mxu0 %v1968_v8  ;;  %v2301_v8 = vld [vmem:[#allocation18 + $0x1a8] sm:$0xff] }
 0x965   : > { %v1924_v10 = vpop.xlane.xlu1 %1923 }
 0x966   : > { %v1927_v14 = vmul.f32 0.0078125, %v1924_v10  ;;  %v2311_v10 = vld [vmem:[#allocation18 + $0x1f8] sm:$0xff] }
 0x967   : > { %v1922_v11 = vpop.xlane.xlu0 %1921  ;;  %2832 = vmatprep.subr.mxu0 %v2311_v10  ;;  %v2285_v10 = vld [vmem:[#allocation18 + $0x128] sm:$0xff] }
 0x968   : > { %v1926_v28 = vmul.f32 0.0078125, %v1922_v11  ;;  %v3970_v16 = vsub.f32 %v3959_v55, %v1927_v14 }
 0x96a   : > { %v3967_v15 = vsub.f32 %v3962_v58, %v1926_v28  ;;  %v1931_v20 = vmul.f32 %v3970_v16, %v3970_v16 }
 0x96c   : > { %v1930_v19 = vmul.f32 %v3967_v15, %v3967_v15 }
 0x96e   : > { %1932 = vadd.xlane.f32.xlu0 %v1930_v19 }
 0x972   : > { %1934 = vadd.xlane.f32.xlu0 %v1931_v20 }
 0x9f7   : > { %v1933_v11 = vpop.xlane.xlu0 %1932 }
 0x9f8   : > { %v1936_v14 = vmul.f32 0.0078125, %v1933_v11  ;;  %v2268_v11 = vld [vmem:[#allocation18 + $0xa0] sm:$0xff] }
 0x9fa   : > { %v1938_v28 = vadd.f32 1e-05, %v1936_v14  ;;  %v2300_v14 = vld [vmem:[#allocation18 + $0x1a0] sm:$0xff] }
 0x9fb   : > { %v1935_v19 = vpop.xlane.xlu0 %1934 }
 0x9fc   : > { %3183 = vrsqrt.f32 %v1938_v28  ;;  %v1937_v20 = vmul.f32 0.0078125, %v1935_v19  ;;  %v2252_v28 = vld [vmem:[#allocation18 + $0x20] sm:$0xff] }
 0x9fd   : > { %v2284_v19 = vld [vmem:[#allocation18 + $0x120] sm:$0xff] }
 0x9fe   : > { %v1939_v21 = vadd.f32 1e-05, %v1937_v20  ;;  %v2267_v20 = vld [vmem:[#allocation18 + $0x98] sm:$0xff] }
 0xa00   : > { %3185 = vrsqrt.f32 %v1939_v21  ;;  %v2299_v21 = vld [vmem:[#allocation18 + $0x198] sm:$0xff] }
 0xa09   : > { %v3184_v23 = vpop.eup %3183 }
 0xa0a   : > { %v1942_v24 = vmul.f32 %v3184_v23, %v3967_v15  ;;  %v2251_v23 = vld [vmem:[#allocation18 + $0x18] sm:$0xff] }
 0xa0c   : > { %v1950_v26 = vmul.f32 %v2716_v17, %v1942_v24  ;;  %v2266_v24 = vld [vmem:[#allocation18 + $0x90] sm:$0xff] }
 0xa0d   : > { %v3186_v27 = vpop.eup %3185 }
 0xa0e   : > { %v1958_v29 = vadd.f32 %v2717_v25, %v1950_v26  ;;  %v1943_v30 = vmul.f32 %v3186_v27, %v3970_v16  ;;  %v2309_v16 = vld [vmem:[#allocation18 + $0x1e8] sm:$0xff]  ;;  %v2250_v26 = vld [vmem:[#allocation18 + $0x10] sm:$0xff] }
 0xa0f   : > { %v2282_v27 = vld [vmem:[#allocation18 + $0x110] sm:$0xff] }
 0xa10   : > { %2117 = vmatmul.mubr.f32.vlgmr.msra.gmra.mxu1 %v1958_v29  ;;  %2194 = vmatmul.mubr.f32.vlgmr.msra.gmra.mxu0 %v1958_v29  ;;  %v1951_v48 = vmul.f32 %v2716_v17, %v1943_v30  ;;  %v2283_v17 = vld [vmem:[#allocation18 + $0x118] sm:$0xff]  ;;  %v2265_v29 = vld [vmem:[#allocation18 + $0x88] sm:$0xff] }
 0xa11   : > { %2122 = vmatprep.mubr.f32.mxu1 %v3496_v56  ;;  %2199 = vmatprep.mubr.f32.mxu0 %v3496_v56  ;;  %v2276_v56 = vld [vmem:[#allocation18 + $0xe0] sm:$0xff]  ;;  %v2297_v30 = vld [vmem:[#allocation18 + $0x188] sm:$0xff] }
 0xa12   : > { %v1959_v15 = vadd.f32 %v2717_v25, %v1951_v48  ;;  %2795 = vmatpush3.msra.mxu1 %v2263_v32  ;;  %2833 = vmatpush3.msra.mxu0 %v2295_v33  ;;  %v2298_v25 = vld [vmem:[#allocation18 + $0x190] sm:$0xff]  ;;  %v2249_v32 = vld [vmem:[#allocation18 + $0x8] sm:$0xff]  ;;  %v2264_v48 = vld [vmem:[#allocation18 + $0x80] sm:$0xff] }
 0xa13   : > { %2796 = vmatprep.subr.mxu1 %v2278_v37  ;;  %2834 = vmatprep.subr.mxu0 %v2310_v38  ;;  %v2281_v33 = vld [vmem:[#allocation18 + $0x108] sm:$0xff]  ;;  %v2296_v37 = vld [vmem:[#allocation18 + $0x180] sm:$0xff] }
 0xa14   : > { %2123 = vmatmul.mubr.f32.gmra.mxu1 %v1959_v15  ;;  %2200 = vmatmul.mubr.f32.gmra.mxu0 %v1959_v15  ;;  %v2248_v38 = vld [vmem:[#allocation18] sm:$0xff] }
 0xa15   : > { %2797 = vmatpush3.msra.mxu1 %v2262_v39  ;;  %2835 = vmatpush3.msra.mxu0 %v2294_v47  ;;  %v2280_v15 = vld [vmem:[#allocation18 + $0x100] sm:$0xff]  ;;  %v2030_v39 = vld [vmem:[%s4067_s10] sm:$0xf]  ;;  %v2046_v47 = vsub.s32 3, %v3781_v12 }
 0xa16   : > { %2798 = vmatprep.subr.mxu1 %v2277_v40  ;;  %2836 = vmatprep.subr.mxu0 %v2309_v16  ;;  %v2035_v40 = vrot.slane %v2030_v39, %v702_v13  ;;  %v2043_v16 = vrot.slane %v2030_v39, %v710_v22 }
 0xa17   : > { %2799 = vmatpush3.msra.mxu1 %v2261_v31  ;;  %2837 = vmatpush3.msra.mxu0 %v2293_v41 }
 0xa18   : > { %2800 = vmatprep.subr.mxu1 %v2276_v56  ;;  %2838 = vmatprep.subr.mxu0 %v2308_v42  ;;  %v2039_v56 = vrot.slane %v2030_v39, %v706_v18  ;;  %v2047_v42 = vrot.slane %v2030_v39, %v2046_v47 }
 0xa19   : > { %2801 = vmatpush3.msra.mxu1 %v2260_v35  ;;  %2839 = vmatpush3.msra.mxu0 %v2292_v43 }
 0xa1a   : > { %2802 = vmatprep.subr.mxu1 %v2275_v44  ;;  %2840 = vmatprep.subr.mxu0 %v2307_v45 }
 0xa1b   : > { %2803 = vmatpush3.msra.mxu1 %v2259_v46  ;;  %2841 = vmatpush3.msra.mxu0 %v2291_v49 }
 0xa1c   : > { %2804 = vmatprep.subr.mxu1 %v2274_v50  ;;  %2842 = vmatprep.subr.mxu0 %v2306_v51 }
 0xa1d   : > { %2805 = vmatpush3.msra.mxu1 %v2258_v52  ;;  %2843 = vmatpush3.msra.mxu0 %v2290_v53 }
 0xa1e   : > { %2806 = vmatprep.subr.mxu1 %v2273_v54  ;;  %2844 = vmatprep.subr.mxu0 %v2305_v57 }
 0xa1f   : > { %2807 = vmatpush3.msra.mxu1 %v2257_v63  ;;  %2845 = vmatpush3.msra.mxu0 %v2289_v34 }
 0xa20   : > { %2808 = vmatprep.subr.mxu1 %v2272_v36  ;;  %2846 = vmatprep.subr.mxu0 %v2304_v59 }
 0xa21   : > { %2809 = vmatpush3.msra.mxu1 %v2256_v2  ;;  %2847 = vmatpush3.msra.mxu0 %v2288_v60 }
 0xa22   : > { %2810 = vmatprep.subr.mxu1 %v2271_v61  ;;  %2848 = vmatprep.subr.mxu0 %v2303_v62 }
 0xa23   : > { %2811 = vmatpush3.msra.mxu1 %v2255_v0  ;;  %2849 = vmatpush3.msra.mxu0 %v2287_v3 }
 0xa24   : > { %2812 = vmatprep.subr.mxu1 %v2270_v1  ;;  %2850 = vmatprep.subr.mxu0 %v2302_v5 }
 0xa25   : > { %2813 = vmatpush3.msra.mxu1 %v2254_v6  ;;  %2851 = vmatpush3.msra.mxu0 %v2286_v7 }
 0xa26   : > { %2814 = vmatprep.subr.mxu1 %v2269_v4  ;;  %2852 = vmatprep.subr.mxu0 %v2301_v8 }
 0xa27   : > { %2815 = vmatpush3.msra.mxu1 %v2253_v9  ;;  %2853 = vmatpush3.msra.mxu0 %v2285_v10 }
 0xa28   : > { %2816 = vmatprep.subr.mxu1 %v2268_v11  ;;  %2854 = vmatprep.subr.mxu0 %v2300_v14 }
 0xa29   : > { %2817 = vmatpush3.msra.mxu1 %v2252_v28  ;;  %2855 = vmatpush3.msra.mxu0 %v2284_v19 }
 0xa2a   : > { %2818 = vmatprep.subr.mxu1 %v2267_v20  ;;  %2856 = vmatprep.subr.mxu0 %v2299_v21 }
 0xa2b   : > { %2819 = vmatpush3.msra.mxu1 %v2251_v23  ;;  %2857 = vmatpush3.msra.mxu0 %v2283_v17 }
 0xa2c   : > { %2820 = vmatprep.subr.mxu1 %v2266_v24  ;;  %2858 = vmatprep.subr.mxu0 %v2298_v25 }
 0xa2d   : > { %2821 = vmatpush3.msra.mxu1 %v2250_v26  ;;  %2859 = vmatpush3.msra.mxu0 %v2282_v27 }
 0xa2e   : > { %2822 = vmatprep.subr.mxu1 %v2265_v29  ;;  %2860 = vmatprep.subr.mxu0 %v2297_v30 }
 0xa2f   : > { %2823 = vmatpush3.msra.mxu1 %v2249_v32  ;;  %2861 = vmatpush3.msra.mxu0 %v2281_v33 }
 0xa30   : > { %2824 = vmatprep.subr.mxu1 %v2264_v48  ;;  %2862 = vmatprep.subr.mxu0 %v2296_v37 }
 0xa31   : > { %2825 = vmatpush3.msra.mxu1 %v2248_v38  ;;  %2863 = vmatpush3.msra.mxu0 %v2280_v15 }
 0xad0   : > { %v2118_v31 = vpop.f32.mrf.mxu1  ;;  %v2195_v41 = vpop.f32.mrf.mxu0 }
 0xad1   : > { %v2119_v35 = vadd.f32 %v2118_v31, %v2035_v40  ;;  %v2196_v43 = vadd.f32 %v2195_v41, %v2043_v16 }
 0xad2   : > { %v2120_v44 = vpop.f32.mrf.mxu1  ;;  %v2197_v45 = vpop.f32.mrf.mxu0 }
 0xad3   : > { %v2214_v46 = vmul.f32 0.70710677, %v2119_v35  ;;  %v2216_v49 = vmul.f32 0.70710677, %v2196_v43  ;;  %v2121_v50 = vadd.f32 %v2120_v44, %v2039_v56  ;;  %v2198_v51 = vadd.f32 %v2197_v45, %v2047_v42  ;;  %v2718_v44 = vld [vmem:[%s4111_s5] ss:$0 sm:$0xff] }
 0xad4   : > { %v2124_v52 = vpop.f32.mrf.mxu1  ;;  %v2201_v53 = vpop.f32.mrf.mxu0  ;;  %v2206_v8 = vmul.f32 0.5, %v2119_v35  ;;  %v2208_v14 = vmul.f32 0.5, %v2196_v43 }
 0xad5   : > { %3187 = verf.f32 %v2214_v46  ;;  %v2125_v13 = vadd.f32 %v2124_v52, %v2035_v40  ;;  %v2202_v54 = vadd.f32 %v2201_v53, %v2043_v16  ;;  %v2215_v22 = vmul.f32 0.70710677, %v2121_v50 }
 0xad6   : > { %3189 = verf.f32 %v2216_v49  ;;  %v2126_v57 = vpop.f32.mrf.mxu1  ;;  %v2203_v63 = vpop.f32.mrf.mxu0  ;;  %v2217_v12 = vmul.f32 0.70710677, %v2198_v51  ;;  %v2207_v6 = vmul.f32 0.5, %v2121_v50  ;;  %v2209_v9 = vmul.f32 0.5, %v2198_v51 }
 0xad7   : > { %v2218_v18 = vmul.f32 0.70710677, %v2125_v13  ;;  %3191 = verf.f32 %v2215_v22  ;;  %v2220_v34 = vmul.f32 0.70710677, %v2202_v54  ;;  %v2127_v36 = vadd.f32 %v2126_v57, %v2039_v56 }
 0xad8   : > { %v2204_v59 = vadd.f32 %v2203_v63, %v2047_v42  ;;  %3193 = verf.f32 %v2217_v12  ;;  %v2210_v29 = vmul.f32 0.5, %v2125_v13  ;;  %v2212_v33 = vmul.f32 0.5, %v2202_v54 }
 0xad9   : > { %3195 = verf.f32 %v2218_v18  ;;  %v2219_v2 = vmul.f32 0.70710677, %v2127_v36  ;;  %v2211_v25 = vmul.f32 0.5, %v2127_v36 }
 0xada   : > { %3197 = verf.f32 %v2220_v34  ;;  %v2221_v60 = vmul.f32 0.70710677, %v2204_v59  ;;  %v2213_v30 = vmul.f32 0.5, %v2204_v59 }
 0xadb   : > { %3199 = verf.f32 %v2219_v2 }
 0xadc   : > { %3201 = verf.f32 %v2221_v60 }
 0xae2   : > { %v3188_v61 = vpop.eup %3187 }
 0xae3   : > { %v3190_v62 = vpop.eup %3189  ;;  %v2230_v3 = vadd.f32 1.0, %v3188_v61 }
 0xae4   : > { %v3192_v0 = vpop.eup %3191  ;;  %v2232_v5 = vadd.f32 1.0, %v3190_v62 }
 0xae5   : > { %v3194_v1 = vpop.eup %3193  ;;  %v2231_v7 = vadd.f32 1.0, %v3192_v0  ;;  %v2238_v20 = vmul.f32 %v2230_v3, %v2206_v8 }
 0xae6   : > { %v3196_v4 = vpop.eup %3195  ;;  %v2233_v10 = vadd.f32 1.0, %v3194_v1  ;;  %v2240_v24 = vmul.f32 %v2232_v5, %v2208_v14 }
 0xae7   : > { %v3198_v11 = vpop.eup %3197  ;;  %v2239_v28 = vmul.f32 %v2231_v7, %v2207_v6  ;;  %v2234_v23 = vadd.f32 1.0, %v3196_v4 }
 0xae8   : > { %v3200_v19 = vpop.eup %3199  ;;  %v2241_v21 = vmul.f32 %v2233_v10, %v2209_v9  ;;  %v2236_v27 = vadd.f32 1.0, %v3198_v11 }
 0xae9   : > { %v3202_v17 = vpop.eup %3201  ;;  %2376 = vmatprep.mubr.f32.mxu1 %v2239_v28  ;;  %v2235_v26 = vadd.f32 1.0, %v3200_v19  ;;  %v2242_v38 = vmul.f32 %v2234_v23, %v2210_v29 }
 0xaea   : > { %2451 = vmatprep.mubr.f32.mxu0 %v2241_v21  ;;  %2377 = vmatmul.mubr.f32.vlgmr.msra.gmra.mxu1 %v2238_v20  ;;  %v2237_v32 = vadd.f32 1.0, %v3202_v17  ;;  %v2244_v15 = vmul.f32 %v2236_v27, %v2212_v33 }
 0xaeb   : > { %2452 = vmatmul.mubr.f32.vlgmr.msra.gmra.mxu0 %v2240_v24  ;;  %v2243_v48 = vmul.f32 %v2235_v26, %v2211_v25 }
 0xaec   : > { %v2245_v37 = vmul.f32 %v2237_v32, %v2213_v30 }
 0xaed   : > { %2381 = vmatprep.mubr.f32.mxu1 %v2243_v48 }
 0xaee   : > { %2456 = vmatprep.mubr.f32.mxu0 %v2245_v37  ;;  %2382 = vmatmul.mubr.f32.gmra.mxu1 %v2242_v38 }
 0xaef   : > { %2457 = vmatmul.mubr.f32.gmra.mxu0 %v2244_v15 }
 0xbaa   : > { %v2826_v39 = vpop.f32.mrf.mxu1 }
 0xbab   : > { %v2864_v47 = vpop.f32.mrf.mxu0 }
 0xbac   : > { %v2827_v40 = vpop.f32.mrf.mxu1 }
 0xbad   : > { %v2828_v16 = vadd.f32 %v2827_v40, %v2826_v39  ;;  %v2865_v31 = vpop.f32.mrf.mxu0 }
 0xbae   : > { %v2866_v41 = vadd.f32 %v2865_v31, %v2864_v47  ;;  %v2829_v56 = vpop.f32.mrf.mxu1 }
 0xbaf   : > { %v2867_v42 = vpop.f32.mrf.mxu0 }
 0xbb0   : > { %v2454_v35 = vadd.f32 %v2866_v41, %v2828_v16  ;;  %v2830_v43 = vpop.f32.mrf.mxu1 }
 0xbb1   : > { %v2831_v45 = vadd.f32 %v2830_v43, %v2829_v56  ;;  %v2868_v46 = vpop.f32.mrf.mxu0 }
 0xbb2   : > { %v2473_v49 = vadd.f32 %v2454_v35, %v3962_v58  ;;  %v2869_v50 = vadd.f32 %v2868_v46, %v2867_v42 }
 0xbb4   : > { %v2482_v51 = vadd.f32 %v2718_v44, %v2473_v49  ;;  %v2459_v52 = vadd.f32 %v2869_v50, %v2831_v45 }
 0xbb6   : > { %2484 = vst [vmem:[%s592_s9] sm:$0xff] %v2482_v51  ;;  %v2474_v53 = vadd.f32 %v2459_v52, %v3959_v55 }
 0xbb8   : > { %v2483_v58 = vadd.f32 %v2718_v44, %v2474_v53 }
 0xbba   : > { %2485 = vst [vmem:[%s592_s9 + $0x8] sm:$0xff] %v2483_v58 }
 0xbbb   : > { %3402 = shalt.err (!%p3399_p6)
}
 0xbbc   : > { %s3403_s24 = scalar_lea.hbm %s4007_s21, 256  ;;  %s3407_s5 = scalar_lea.hbm %s4112_s20, 512 }
 0xbbd   : > { %p3404_p12 = scmp.ne.s32.totalorder %s4007_s21, %s3403_s24  ;;  %p3408_p4 = scmp.lt.s32.totalorder %s4007_s21, %s4112_s20 }
 0xbbe   : > { %p3409_p2 = scmp.lt.s32.totalorder %s3407_s5, %s3403_s24 }
 0xbbf   : > { %p3405_p13 = pnand %p3404_p12, %p3710_p1 }
 0xbc0   : > { %p3410_p3 = por %p3409_p2, %p3408_p4 }
 0xbc1   : > { %p3406_p11 = pneg %p3405_p13 }
 0xbc3   : > { %p3411_p5 = pnand %p3410_p3, %p3406_p11 }
 0xbc5   : > { %3414 = shalt.err (!%p3411_p5)
}
 0xbc6   : > { %s3501_s14 = smov 128   ;;  %s3502_s17 = smov 8  }
 0xbc7   : > { %3022 = dma.vmem_to_hbm [thread:$0]  (%p3710_p1), %s4009_s15, 256, %s4007_s21, %s2487_s1, %s3501_s14, %s3501_s14, %s3502_s17  }
 0xbc8 PF: > { %s2517_s11 = sand.u32 1, %s3461_s25   ;;  %p4113_p7 = scmp.ge.s32.totalorder %s3481_s30, 2 }
 0xbc9   : > { %s2518_s23 = scalar_lea.sflag [#allocation9], %s2517_s11 }
 0xbca   : > { %p3048_p9 = pnand %p4113_p7, %p3717_p0 }
 0xbcc   : > { %p3049_p8 = pneg %p3048_p9 }
 0xbce   : > { %3456 = dma.done.wait (%p3049_p8), %s2518_s23, 256  }
 0xbcf   : > { %3458 = vsyncadd (%p3049_p8), %s2518_s23, 4294967040  ;;  %s32_s30 = sadd.s32 1, %s3481_s30   ;;  %s4114_s22 = sld [smem:[#allocation26_spill]] }
 0xbd0   : > { %p29_p10 = scmp.ge.s32.totalorder %s32_s30, 4   ;;  %s4115_s25 = smov %s3465_s26 }
 0xbd1   : > { %s4116_s26 = smov %s3469_s27  ;;  %s4117_s27 = smov %s3715_s18 }
 0xbd2   : > { %s4118_s28 = smov %s3477_s29  ;;  %31 = sbr.rel (!%p29_p10) target bundleno = 18 (0x12), region = 161 }
 0xbd5   : > { %s4119_s29 = smov %s4114_s22 }
 0xbd7   :  { %2523 = vsyncpa [#allocation8], 1 }
 0xbd8   :  { %2525 = vsyncpa [#allocation8 + $0x1], 1 }
 0xbd9   :  { %2526 = vsyncpa [#allocation11], 1 }
 0xbda   :  { %2527 = vsyncpa [#allocation14], 1 }
 0xbdb   :  { %2528 = vsyncpa [#allocation17], 1 }
 0xbdc   :  { %2529 = vsyncpa [#allocation9], 1 }
 0xbdd   :  { %2531 = vsyncpa [#allocation9 + $0x1], 1 }

</bundles_post_ra>
